<compile_context>
chip_gen: v5e
topology: v5e:2x2
jax: 0.10.0
libtpu: 0.0.40
codegen_flags: <defaults>
</compile_context>

<pallas_src>
import math
import functools

import jax
import jax.numpy as jnp
from jax.experimental import pallas as pl

NUM_LAYERS = 2
MODEL_DIM = 32
NUM_HEADS = 4
FF_DIM = 64
LN_EPS = 1e-5


# ----------------------------------------------------------------------------
# Single fused kernel: PE add + NUM_LAYERS transformer encoder layers
# ----------------------------------------------------------------------------
def fused_encoder_kernel(x_ref, pe_ref, mask_ref,
                         wqkv_ref, bqkv_ref, wo_ref, bo_ref,
                         w1_ref, b1_ref, w2_ref, b2_ref,
                         g1_ref, be1_ref, g2_ref, be2_ref,
                         o_ref, *, num_layers, num_heads, seq):
    BS, D = x_ref.shape
    batch = BS // seq
    hd = D // num_heads
    bf16 = jnp.bfloat16

    # --- positional encoding add (pe_ref is (B, D); broadcast over sequence) -----
    pe_full = jnp.concatenate(
        [jnp.broadcast_to(pe_ref[b:b + 1, :], (seq, D)) for b in range(batch)],
        axis=0)                                                 # (BS, D)
    x = x_ref[...] + pe_full
    # TODO(synk): dropout after positional encoding is eval-mode identity.

    # Precomputed additive block-diagonal mask over the head-folded row axis.
    # Rows are ordered (head, batch, seq); groups of S rows only attend within
    # themselves -> enforces head- and batch-separation with one score matmul.
    mask = mask_ref[...]                                        # (H*BS, H*BS) f32

    for l in range(num_layers):                                 # static unroll (L=2)
        # ---- fused QKV projection: one (BS, D) @ (D, 3D) bf16 matmul -------------
        # (Q columns of wqkv/bqkv pre-scaled by 1/sqrt(hd) at pack time.)
        qkv = jnp.dot(x.astype(bf16), wqkv_ref[l],
                      preferred_element_type=jnp.float32) + bqkv_ref[l]   # (BS, 3D) f32

        # ---- fold heads into the sublane (row) axis: (BS, D) -> (H*BS, hd) -------
        def fold(c0):
            return jnp.concatenate(
                [qkv[:, c0 + h * hd: c0 + (h + 1) * hd] for h in range(num_heads)],
                axis=0)
        q = fold(0).astype(bf16)                                # (H*BS, hd)
        k = fold(D).astype(bf16)
        v = fold(2 * D).astype(bf16)

        # ---- one masked score matmul + one softmax (all heads & batches) ---------
        s = jax.lax.dot_general(q, k, (((1,), (1,)), ((), ())),
                                preferred_element_type=jnp.float32)       # (H*BS, H*BS)
        s = s + mask                                            # mask stays f32
        s = s - jnp.max(s, axis=-1, keepdims=True)
        p = jnp.exp(s)
        p = p * pl.reciprocal(jnp.sum(p, axis=-1, keepdims=True), approx=True)

        # ---- P @ V, unfold heads back to lanes, single output projection ---------
        ctx = jnp.dot(p.astype(bf16), v,
                      preferred_element_type=jnp.float32)       # (H*BS, hd)
        ctx = jnp.concatenate(
            [ctx[h * BS:(h + 1) * BS, :] for h in range(num_heads)], axis=1)  # (BS, D)
        attn = jnp.dot(ctx.astype(bf16), wo_ref[l],
                       preferred_element_type=jnp.float32) + bo_ref[l]

        # ---- residual + LayerNorm 1 (post-norm), f32 ------------------------------
        y = x + attn
        mu = jnp.mean(y, axis=-1, keepdims=True)
        var = jnp.mean((y - mu) ** 2, axis=-1, keepdims=True)
        y = (y - mu) * jax.lax.rsqrt(var + LN_EPS) * g1_ref[l] + be1_ref[l]

        # ---- feed-forward (ReLU), bf16 matmul operands ----------------------------
        h1 = jnp.dot(y.astype(bf16), w1_ref[l],
                     preferred_element_type=jnp.float32) + b1_ref[l]
        h1 = jnp.maximum(h1, 0.0)
        h2 = jnp.dot(h1.astype(bf16), w2_ref[l],
                     preferred_element_type=jnp.float32) + b2_ref[l]

        # ---- residual + LayerNorm 2 -----------------------------------------------
        z = y + h2
        mu2 = jnp.mean(z, axis=-1, keepdims=True)
        var2 = jnp.mean((z - mu2) ** 2, axis=-1, keepdims=True)
        x = (z - mu2) * jax.lax.rsqrt(var2 + LN_EPS) * g2_ref[l] + be2_ref[l]

    o_ref[...] = x


# ----------------------------------------------------------------------------
# Wrapper: pack per-layer params (bf16 matmul weights, scale folded) + pallas_call
# ----------------------------------------------------------------------------
def pack_params(layer_params, num_heads):
    D = layer_params[0]["wq"].shape[0]
    hd = D // num_heads
    scale = 1.0 / math.sqrt(hd)
    st = lambda name: jnp.stack([p[name] for p in layer_params])
    wqkv = jnp.stack([jnp.concatenate([p["wq"] * scale, p["wk"], p["wv"]], axis=1)
                      for p in layer_params]).astype(jnp.bfloat16)        # (L, D, 3D)
    bqkv = jnp.stack([jnp.concatenate([p["bq"] * scale, p["bk"], p["bv"]], axis=1)
                      for p in layer_params])                             # (L, 1, 3D) f32
    return dict(
        wqkv=wqkv, bqkv=bqkv,
        wo=st("wo").astype(jnp.bfloat16), bo=st("bo"),
        w1=st("w1").astype(jnp.bfloat16), b1=st("b1"),
        w2=st("w2").astype(jnp.bfloat16), b2=st("b2"),
        g1=st("g1"), be1=st("be1"), g2=st("g2"), be2=st("be2"),
    )


def encoder_forward(x, pe, layer_params, num_heads=NUM_HEADS):
    B, S, D = x.shape
    L = len(layer_params)
    packed = pack_params(layer_params, num_heads)

    # pe[:x.size(0)] quirk: slice by *batch*; broadcast over sequence inside the kernel.
    pe_rows = pe[:B, 0, :]                                      # (B, D)
    x_slab = x.reshape(B * S, D)

    # Block-diagonal additive mask over the head-folded (H*B*S) row axis.
    HBS = num_heads * B * S
    grp = jnp.arange(HBS, dtype=jnp.int32) // S
    mask = jnp.where(grp[:, None] == grp[None, :], 0.0, -1e30).astype(jnp.float32)

    kernel = functools.partial(fused_encoder_kernel,
                               num_layers=L, num_heads=num_heads, seq=S)
    out = pl.pallas_call(
        kernel,
        out_shape=jax.ShapeDtypeStruct((B * S, D), jnp.float32),
    )(x_slab, pe_rows, mask,
      packed["wqkv"], packed["bqkv"], packed["wo"], packed["bo"],
      packed["w1"], packed["b1"], packed["w2"], packed["b2"],
      packed["g1"], packed["be1"], packed["g2"], packed["be2"])
    return out.reshape(B, S, D)


# ----------------------------------------------------------------------------
# Parameter / buffer construction (deterministic, synthetic)
# ----------------------------------------------------------------------------
def build_positional_encoding(model_dim, max_len=5000):
    pos = jnp.arange(max_len, dtype=jnp.float32)[:, None]
    div = jnp.exp(jnp.arange(0, model_dim, 2, dtype=jnp.float32)
                  * (-math.log(10000.0) / model_dim))
    ang = pos * div
    pe = jnp.zeros((max_len, 1, model_dim), jnp.float32)
    pe = pe.at[:, 0, 0::2].set(jnp.sin(ang))
    pe = pe.at[:, 0, 1::2].set(jnp.cos(ang))
    return pe


def init_layer_params(key, d, f):
    ks = jax.random.split(key, 6)
    s_d = 1.0 / math.sqrt(d)
    s_f = 1.0 / math.sqrt(f)
    return dict(
        wq=jax.random.normal(ks[0], (d, d), jnp.float32) * s_d,
        wk=jax.random.normal(ks[1], (d, d), jnp.float32) * s_d,
        wv=jax.random.normal(ks[2], (d, d), jnp.float32) * s_d,
        bq=jnp.zeros((1, d), jnp.float32),
        bk=jnp.zeros((1, d), jnp.float32),
        bv=jnp.zeros((1, d), jnp.float32),
        wo=jax.random.normal(ks[3], (d, d), jnp.float32) * s_d,
        bo=jnp.zeros((1, d), jnp.float32),
        w1=jax.random.normal(ks[4], (d, f), jnp.float32) * s_d,
        b1=jnp.zeros((1, f), jnp.float32),
        w2=jax.random.normal(ks[5], (f, d), jnp.float32) * s_f,
        b2=jnp.zeros((1, d), jnp.float32),
        g1=jnp.ones((1, d), jnp.float32),
        be1=jnp.zeros((1, d), jnp.float32),
        g2=jnp.ones((1, d), jnp.float32),
        be2=jnp.zeros((1, d), jnp.float32),
    )


# ----------------------------------------------------------------------------
# Pure-JAX f32 reference (for correctness check)
# ----------------------------------------------------------------------------
def _ref_layernorm(x, g, b):
    mu = jnp.mean(x, axis=-1, keepdims=True)
    var = jnp.mean((x - mu) ** 2, axis=-1, keepdims=True)
    return (x - mu) * jax.lax.rsqrt(var + LN_EPS) * g + b


def _ref_layer(x, p, num_heads):
    B, S, D = x.shape
    hd = D // num_heads
    q = (x @ p["wq"] + p["bq"]).reshape(B, S, num_heads, hd).transpose(0, 2, 1, 3)
    k = (x @ p["wk"] + p["bk"]).reshape(B, S, num_heads, hd).transpose(0, 2, 1, 3)
    v = (x @ p["wv"] + p["bv"]).reshape(B, S, num_heads, hd).transpose(0, 2, 1, 3)
    s = jnp.einsum("bhqd,bhkd->bhqk", q, k) / math.sqrt(hd)
    a = jnp.einsum("bhqk,bhkd->bhqd", jax.nn.softmax(s, axis=-1), v)
    a = a.transpose(0, 2, 1, 3).reshape(B, S, D) @ p["wo"] + p["bo"]
    y = _ref_layernorm(x + a, p["g1"], p["be1"])
    h = jnp.maximum(y @ p["w1"] + p["b1"], 0.0) @ p["w2"] + p["b2"]
    return _ref_layernorm(y + h, p["g2"], p["be2"])


def reference_forward(x, pe, layer_params, num_heads=NUM_HEADS):
    x = x + pe[: x.shape[0]]
    for p in layer_params:
        x = _ref_layer(x, p, num_heads)
    return x


# ----------------------------------------------------------------------------
if __name__ == "__main__":
    B, S = 2, 8
    key = jax.random.PRNGKey(0)
    kx, kp = jax.random.split(key)

    x = jax.random.normal(kx, (B, S, MODEL_DIM), jnp.float32)
    pe = build_positional_encoding(MODEL_DIM, max_len=5000)
    layer_params = [init_layer_params(k, MODEL_DIM, FF_DIM)
                    for k in jax.random.split(kp, NUM_LAYERS)]

    out = encoder_forward(x, pe, layer_params)
    out = jax.block_until_ready(out)

    ref = reference_forward(x, pe, layer_params)
    assert out.shape == (B, S, MODEL_DIM)
    # Tolerance accounts for bf16 MXU operands + approx-reciprocal softmax vs the
    # f32 reference; a real bug (mask / head-fold / layout) would be O(1) off.
    max_err = float(jnp.max(jnp.abs(out - ref)))
    assert max_err < 3e-2, f"mismatch vs reference: {max_err}"

    print("KERNEL_OK")
</pallas_src>

<mosaic_0001>
module attributes {stable_mosaic.version = 11 : i64} {
  func.func @fused_encoder_kernel(%arg0: memref<16x32xf32, #tpu.memory_space<vmem>>, %arg1: memref<2x32xf32, #tpu.memory_space<vmem>>, %arg2: memref<64x64xf32, #tpu.memory_space<vmem>>, %arg3: memref<2x32x96xbf16, #tpu.memory_space<vmem>>, %arg4: memref<2x1x96xf32, #tpu.memory_space<vmem>>, %arg5: memref<2x32x32xbf16, #tpu.memory_space<vmem>>, %arg6: memref<2x1x32xf32, #tpu.memory_space<vmem>>, %arg7: memref<2x32x64xbf16, #tpu.memory_space<vmem>>, %arg8: memref<2x1x64xf32, #tpu.memory_space<vmem>>, %arg9: memref<2x64x32xbf16, #tpu.memory_space<vmem>>, %arg10: memref<2x1x32xf32, #tpu.memory_space<vmem>>, %arg11: memref<2x1x32xf32, #tpu.memory_space<vmem>>, %arg12: memref<2x1x32xf32, #tpu.memory_space<vmem>>, %arg13: memref<2x1x32xf32, #tpu.memory_space<vmem>>, %arg14: memref<2x1x32xf32, #tpu.memory_space<vmem>>, %arg15: memref<16x32xf32, #tpu.memory_space<vmem>>) attributes {dimension_semantics = [], scalar_prefetch = 0 : i64, scratch_operands = 0 : i64, tpu.core_type = #tpu.core_type<tc>} {
    %c0 = arith.constant 0 : index
    %c0_0 = arith.constant 0 : index
    %0 = vector.load %arg1[%c0, %c0_0] : memref<2x32xf32, #tpu.memory_space<vmem>>, vector<1x32xf32>
    %1 = vector.shape_cast %0 : vector<1x32xf32> to vector<1x32xf32>
    %2 = vector.broadcast %1 : vector<1x32xf32> to vector<8x32xf32>
    %c1 = arith.constant 1 : index
    %c0_1 = arith.constant 0 : index
    %3 = vector.load %arg1[%c1, %c0_1] : memref<2x32xf32, #tpu.memory_space<vmem>>, vector<1x32xf32>
    %4 = vector.shape_cast %3 : vector<1x32xf32> to vector<1x32xf32>
    %5 = vector.broadcast %4 : vector<1x32xf32> to vector<8x32xf32>
    %6 = tpu.concatenate %2, %5 in 0 : vector<8x32xf32>, vector<8x32xf32> -> vector<16x32xf32>
    %c0_2 = arith.constant 0 : index
    %c0_3 = arith.constant 0 : index
    %7 = vector.load %arg0[%c0_2, %c0_3] : memref<16x32xf32, #tpu.memory_space<vmem>>, vector<16x32xf32>
    %8 = arith.addf %7, %6 : vector<16x32xf32>
    %c0_4 = arith.constant 0 : index
    %c0_5 = arith.constant 0 : index
    %9 = vector.load %arg2[%c0_4, %c0_5] : memref<64x64xf32, #tpu.memory_space<vmem>>, vector<64x64xf32>
    %10 = arith.truncf %8 : vector<16x32xf32> to vector<16x32xbf16>
    %c0_6 = arith.constant 0 : index
    %c0_7 = arith.constant 0 : index
    %c0_8 = arith.constant 0 : index
    %11 = vector.load %arg3[%c0_6, %c0_7, %c0_8] : memref<2x32x96xbf16, #tpu.memory_space<vmem>>, vector<1x32x96xbf16>
    %12 = vector.shape_cast %11 : vector<1x32x96xbf16> to vector<32x96xbf16>
    %cst = arith.constant dense<0.000000e+00> : vector<16x96xf32>
    %13 = tpu.matmul %10, %12, %cst {dimension_numbers = #tpu.dot_dimension_numbers<[1], [0], [0], [1], [0, 0, 1, 1], [], []>} : vector<16x32xbf16>, vector<32x96xbf16>, vector<16x96xf32> -> vector<16x96xf32>
    %c0_9 = arith.constant 0 : index
    %c0_10 = arith.constant 0 : index
    %c0_11 = arith.constant 0 : index
    %14 = vector.load %arg4[%c0_9, %c0_10, %c0_11] : memref<2x1x96xf32, #tpu.memory_space<vmem>>, vector<1x1x96xf32>
    %15 = vector.shape_cast %14 : vector<1x1x96xf32> to vector<1x96xf32>
    %16 = vector.broadcast %15 : vector<1x96xf32> to vector<16x96xf32>
    %17 = arith.addf %13, %16 : vector<16x96xf32>
    %18 = vector.extract_strided_slice %17 {offsets = [0, 0], sizes = [16, 8], strides = [1, 1]} : vector<16x96xf32> to vector<16x8xf32>
    %19 = vector.extract_strided_slice %17 {offsets = [0, 8], sizes = [16, 8], strides = [1, 1]} : vector<16x96xf32> to vector<16x8xf32>
    %20 = vector.extract_strided_slice %17 {offsets = [0, 16], sizes = [16, 8], strides = [1, 1]} : vector<16x96xf32> to vector<16x8xf32>
    %21 = vector.extract_strided_slice %17 {offsets = [0, 24], sizes = [16, 8], strides = [1, 1]} : vector<16x96xf32> to vector<16x8xf32>
    %22 = tpu.concatenate %18, %19, %20, %21 in 0 : vector<16x8xf32>, vector<16x8xf32>, vector<16x8xf32>, vector<16x8xf32> -> vector<64x8xf32>
    %23 = arith.truncf %22 : vector<64x8xf32> to vector<64x8xbf16>
    %24 = vector.extract_strided_slice %17 {offsets = [0, 32], sizes = [16, 8], strides = [1, 1]} : vector<16x96xf32> to vector<16x8xf32>
    %25 = vector.extract_strided_slice %17 {offsets = [0, 40], sizes = [16, 8], strides = [1, 1]} : vector<16x96xf32> to vector<16x8xf32>
    %26 = vector.extract_strided_slice %17 {offsets = [0, 48], sizes = [16, 8], strides = [1, 1]} : vector<16x96xf32> to vector<16x8xf32>
    %27 = vector.extract_strided_slice %17 {offsets = [0, 56], sizes = [16, 8], strides = [1, 1]} : vector<16x96xf32> to vector<16x8xf32>
    %28 = tpu.concatenate %24, %25, %26, %27 in 0 : vector<16x8xf32>, vector<16x8xf32>, vector<16x8xf32>, vector<16x8xf32> -> vector<64x8xf32>
    %29 = arith.truncf %28 : vector<64x8xf32> to vector<64x8xbf16>
    %30 = vector.extract_strided_slice %17 {offsets = [0, 64], sizes = [16, 8], strides = [1, 1]} : vector<16x96xf32> to vector<16x8xf32>
    %31 = vector.extract_strided_slice %17 {offsets = [0, 72], sizes = [16, 8], strides = [1, 1]} : vector<16x96xf32> to vector<16x8xf32>
    %32 = vector.extract_strided_slice %17 {offsets = [0, 80], sizes = [16, 8], strides = [1, 1]} : vector<16x96xf32> to vector<16x8xf32>
    %33 = vector.extract_strided_slice %17 {offsets = [0, 88], sizes = [16, 8], strides = [1, 1]} : vector<16x96xf32> to vector<16x8xf32>
    %34 = tpu.concatenate %30, %31, %32, %33 in 0 : vector<16x8xf32>, vector<16x8xf32>, vector<16x8xf32>, vector<16x8xf32> -> vector<64x8xf32>
    %35 = arith.truncf %34 : vector<64x8xf32> to vector<64x8xbf16>
    %cst_12 = arith.constant dense<0.000000e+00> : vector<64x64xf32>
    %36 = tpu.matmul %23, %29, %cst_12 {dimension_numbers = #tpu.dot_dimension_numbers<[1], [1], [0], [0], [0, 0, 1, 0], [], []>} : vector<64x8xbf16>, vector<64x8xbf16>, vector<64x64xf32> -> vector<64x64xf32>
    %37 = arith.addf %36, %9 : vector<64x64xf32>
    %cst_13 = arith.constant dense<0xFF800000> : vector<64xf32>
    %38 = vector.multi_reduction <maximumf>, %37, %cst_13 [1] : vector<64x64xf32> to vector<64xf32>
    %39 = vector.shape_cast %38 : vector<64xf32> to vector<64x1xf32>
    %40 = vector.broadcast %39 : vector<64x1xf32> to vector<64x64xf32>
    %41 = arith.subf %37, %40 : vector<64x64xf32>
    %42 = math.exp %41 : vector<64x64xf32>
    %cst_14 = arith.constant dense<0.000000e+00> : vector<64xf32>
    %43 = vector.multi_reduction <add>, %42, %cst_14 [1] : vector<64x64xf32> to vector<64xf32>
    %44 = vector.shape_cast %43 : vector<64xf32> to vector<64x1xf32>
    %45 = tpu.reciprocal %44 {approx = true} : vector<64x1xf32> -> vector<64x1xf32>
    %46 = vector.broadcast %45 : vector<64x1xf32> to vector<64x64xf32>
    %47 = arith.mulf %42, %46 : vector<64x64xf32>
    %48 = arith.truncf %47 : vector<64x64xf32> to vector<64x64xbf16>
    %cst_15 = arith.constant dense<0.000000e+00> : vector<64x8xf32>
    %49 = tpu.matmul %48, %35, %cst_15 {dimension_numbers = #tpu.dot_dimension_numbers<[1], [0], [0], [1], [0, 0, 1, 1], [], []>} : vector<64x64xbf16>, vector<64x8xbf16>, vector<64x8xf32> -> vector<64x8xf32>
    %50 = vector.extract_strided_slice %49 {offsets = [0, 0], sizes = [16, 8], strides = [1, 1]} : vector<64x8xf32> to vector<16x8xf32>
    %51 = vector.extract_strided_slice %49 {offsets = [16, 0], sizes = [16, 8], strides = [1, 1]} : vector<64x8xf32> to vector<16x8xf32>
    %52 = vector.extract_strided_slice %49 {offsets = [32, 0], sizes = [16, 8], strides = [1, 1]} : vector<64x8xf32> to vector<16x8xf32>
    %53 = vector.extract_strided_slice %49 {offsets = [48, 0], sizes = [16, 8], strides = [1, 1]} : vector<64x8xf32> to vector<16x8xf32>
    %54 = tpu.concatenate %50, %51, %52, %53 in 1 : vector<16x8xf32>, vector<16x8xf32>, vector<16x8xf32>, vector<16x8xf32> -> vector<16x32xf32>
    %55 = arith.truncf %54 : vector<16x32xf32> to vector<16x32xbf16>
    %c0_16 = arith.constant 0 : index
    %c0_17 = arith.constant 0 : index
    %c0_18 = arith.constant 0 : index
    %56 = vector.load %arg5[%c0_16, %c0_17, %c0_18] : memref<2x32x32xbf16, #tpu.memory_space<vmem>>, vector<1x32x32xbf16>
    %57 = vector.shape_cast %56 : vector<1x32x32xbf16> to vector<32x32xbf16>
    %cst_19 = arith.constant dense<0.000000e+00> : vector<16x32xf32>
    %58 = tpu.matmul %55, %57, %cst_19 {dimension_numbers = #tpu.dot_dimension_numbers<[1], [0], [0], [1], [0, 0, 1, 1], [], []>} : vector<16x32xbf16>, vector<32x32xbf16>, vector<16x32xf32> -> vector<16x32xf32>
    %c0_20 = arith.constant 0 : index
    %c0_21 = arith.constant 0 : index
    %c0_22 = arith.constant 0 : index
    %59 = vector.load %arg6[%c0_20, %c0_21, %c0_22] : memref<2x1x32xf32, #tpu.memory_space<vmem>>, vector<1x1x32xf32>
    %60 = vector.shape_cast %59 : vector<1x1x32xf32> to vector<1x32xf32>
    %61 = vector.broadcast %60 : vector<1x32xf32> to vector<16x32xf32>
    %62 = arith.addf %58, %61 : vector<16x32xf32>
    %63 = arith.addf %8, %62 : vector<16x32xf32>
    %cst_23 = arith.constant dense<0.000000e+00> : vector<16xf32>
    %64 = vector.multi_reduction <add>, %63, %cst_23 [1] : vector<16x32xf32> to vector<16xf32>
    %65 = vector.shape_cast %64 : vector<16xf32> to vector<16x1xf32>
    %cst_24 = arith.constant 3.200000e+01 : f32
    %66 = vector.broadcast %cst_24 : f32 to vector<16x1xf32>
    %67 = arith.divf %65, %66 : vector<16x1xf32>
    %68 = vector.broadcast %67 : vector<16x1xf32> to vector<16x32xf32>
    %69 = arith.subf %63, %68 : vector<16x32xf32>
    %70 = arith.mulf %69, %69 : vector<16x32xf32>
    %cst_25 = arith.constant dense<0.000000e+00> : vector<16xf32>
    %71 = vector.multi_reduction <add>, %70, %cst_25 [1] : vector<16x32xf32> to vector<16xf32>
    %72 = vector.shape_cast %71 : vector<16xf32> to vector<16x1xf32>
    %cst_26 = arith.constant 3.200000e+01 : f32
    %73 = vector.broadcast %cst_26 : f32 to vector<16x1xf32>
    %74 = arith.divf %72, %73 : vector<16x1xf32>
    %75 = vector.broadcast %67 : vector<16x1xf32> to vector<16x32xf32>
    %76 = arith.subf %63, %75 : vector<16x32xf32>
    %cst_27 = arith.constant 9.99999974E-6 : f32
    %77 = vector.broadcast %cst_27 : f32 to vector<16x1xf32>
    %78 = arith.addf %74, %77 : vector<16x1xf32>
    %79 = math.rsqrt %78 : vector<16x1xf32>
    %80 = vector.broadcast %79 : vector<16x1xf32> to vector<16x32xf32>
    %81 = arith.mulf %76, %80 : vector<16x32xf32>
    %c0_28 = arith.constant 0 : index
    %c0_29 = arith.constant 0 : index
    %c0_30 = arith.constant 0 : index
    %82 = vector.load %arg11[%c0_28, %c0_29, %c0_30] : memref<2x1x32xf32, #tpu.memory_space<vmem>>, vector<1x1x32xf32>
    %83 = vector.shape_cast %82 : vector<1x1x32xf32> to vector<1x32xf32>
    %84 = vector.broadcast %83 : vector<1x32xf32> to vector<16x32xf32>
    %85 = arith.mulf %81, %84 : vector<16x32xf32>
    %c0_31 = arith.constant 0 : index
    %c0_32 = arith.constant 0 : index
    %c0_33 = arith.constant 0 : index
    %86 = vector.load %arg12[%c0_31, %c0_32, %c0_33] : memref<2x1x32xf32, #tpu.memory_space<vmem>>, vector<1x1x32xf32>
    %87 = vector.shape_cast %86 : vector<1x1x32xf32> to vector<1x32xf32>
    %88 = vector.broadcast %87 : vector<1x32xf32> to vector<16x32xf32>
    %89 = arith.addf %85, %88 : vector<16x32xf32>
    %90 = arith.truncf %89 : vector<16x32xf32> to vector<16x32xbf16>
    %c0_34 = arith.constant 0 : index
    %c0_35 = arith.constant 0 : index
    %c0_36 = arith.constant 0 : index
    %91 = vector.load %arg7[%c0_34, %c0_35, %c0_36] : memref<2x32x64xbf16, #tpu.memory_space<vmem>>, vector<1x32x64xbf16>
    %92 = vector.shape_cast %91 : vector<1x32x64xbf16> to vector<32x64xbf16>
    %cst_37 = arith.constant dense<0.000000e+00> : vector<16x64xf32>
    %93 = tpu.matmul %90, %92, %cst_37 {dimension_numbers = #tpu.dot_dimension_numbers<[1], [0], [0], [1], [0, 0, 1, 1], [], []>} : vector<16x32xbf16>, vector<32x64xbf16>, vector<16x64xf32> -> vector<16x64xf32>
    %c0_38 = arith.constant 0 : index
    %c0_39 = arith.constant 0 : index
    %c0_40 = arith.constant 0 : index
    %94 = vector.load %arg8[%c0_38, %c0_39, %c0_40] : memref<2x1x64xf32, #tpu.memory_space<vmem>>, vector<1x1x64xf32>
    %95 = vector.shape_cast %94 : vector<1x1x64xf32> to vector<1x64xf32>
    %96 = vector.broadcast %95 : vector<1x64xf32> to vector<16x64xf32>
    %97 = arith.addf %93, %96 : vector<16x64xf32>
    %cst_41 = arith.constant 0.000000e+00 : f32
    %98 = vector.broadcast %cst_41 : f32 to vector<16x64xf32>
    %99 = arith.maximumf %97, %98 : vector<16x64xf32>
    %100 = arith.truncf %99 : vector<16x64xf32> to vector<16x64xbf16>
    %c0_42 = arith.constant 0 : index
    %c0_43 = arith.constant 0 : index
    %c0_44 = arith.constant 0 : index
    %101 = vector.load %arg9[%c0_42, %c0_43, %c0_44] : memref<2x64x32xbf16, #tpu.memory_space<vmem>>, vector<1x64x32xbf16>
    %102 = vector.shape_cast %101 : vector<1x64x32xbf16> to vector<64x32xbf16>
    %cst_45 = arith.constant dense<0.000000e+00> : vector<16x32xf32>
    %103 = tpu.matmul %100, %102, %cst_45 {dimension_numbers = #tpu.dot_dimension_numbers<[1], [0], [0], [1], [0, 0, 1, 1], [], []>} : vector<16x64xbf16>, vector<64x32xbf16>, vector<16x32xf32> -> vector<16x32xf32>
    %c0_46 = arith.constant 0 : index
    %c0_47 = arith.constant 0 : index
    %c0_48 = arith.constant 0 : index
    %104 = vector.load %arg10[%c0_46, %c0_47, %c0_48] : memref<2x1x32xf32, #tpu.memory_space<vmem>>, vector<1x1x32xf32>
    %105 = vector.shape_cast %104 : vector<1x1x32xf32> to vector<1x32xf32>
    %106 = vector.broadcast %105 : vector<1x32xf32> to vector<16x32xf32>
    %107 = arith.addf %103, %106 : vector<16x32xf32>
    %108 = arith.addf %89, %107 : vector<16x32xf32>
    %cst_49 = arith.constant dense<0.000000e+00> : vector<16xf32>
    %109 = vector.multi_reduction <add>, %108, %cst_49 [1] : vector<16x32xf32> to vector<16xf32>
    %110 = vector.shape_cast %109 : vector<16xf32> to vector<16x1xf32>
    %cst_50 = arith.constant 3.200000e+01 : f32
    %111 = vector.broadcast %cst_50 : f32 to vector<16x1xf32>
    %112 = arith.divf %110, %111 : vector<16x1xf32>
    %113 = vector.broadcast %112 : vector<16x1xf32> to vector<16x32xf32>
    %114 = arith.subf %108, %113 : vector<16x32xf32>
    %115 = arith.mulf %114, %114 : vector<16x32xf32>
    %cst_51 = arith.constant dense<0.000000e+00> : vector<16xf32>
    %116 = vector.multi_reduction <add>, %115, %cst_51 [1] : vector<16x32xf32> to vector<16xf32>
    %117 = vector.shape_cast %116 : vector<16xf32> to vector<16x1xf32>
    %cst_52 = arith.constant 3.200000e+01 : f32
    %118 = vector.broadcast %cst_52 : f32 to vector<16x1xf32>
    %119 = arith.divf %117, %118 : vector<16x1xf32>
    %120 = vector.broadcast %112 : vector<16x1xf32> to vector<16x32xf32>
    %121 = arith.subf %108, %120 : vector<16x32xf32>
    %cst_53 = arith.constant 9.99999974E-6 : f32
    %122 = vector.broadcast %cst_53 : f32 to vector<16x1xf32>
    %123 = arith.addf %119, %122 : vector<16x1xf32>
    %124 = math.rsqrt %123 : vector<16x1xf32>
    %125 = vector.broadcast %124 : vector<16x1xf32> to vector<16x32xf32>
    %126 = arith.mulf %121, %125 : vector<16x32xf32>
    %c0_54 = arith.constant 0 : index
    %c0_55 = arith.constant 0 : index
    %c0_56 = arith.constant 0 : index
    %127 = vector.load %arg13[%c0_54, %c0_55, %c0_56] : memref<2x1x32xf32, #tpu.memory_space<vmem>>, vector<1x1x32xf32>
    %128 = vector.shape_cast %127 : vector<1x1x32xf32> to vector<1x32xf32>
    %129 = vector.broadcast %128 : vector<1x32xf32> to vector<16x32xf32>
    %130 = arith.mulf %126, %129 : vector<16x32xf32>
    %c0_57 = arith.constant 0 : index
    %c0_58 = arith.constant 0 : index
    %c0_59 = arith.constant 0 : index
    %131 = vector.load %arg14[%c0_57, %c0_58, %c0_59] : memref<2x1x32xf32, #tpu.memory_space<vmem>>, vector<1x1x32xf32>
    %132 = vector.shape_cast %131 : vector<1x1x32xf32> to vector<1x32xf32>
    %133 = vector.broadcast %132 : vector<1x32xf32> to vector<16x32xf32>
    %134 = arith.addf %130, %133 : vector<16x32xf32>
    %135 = arith.truncf %134 : vector<16x32xf32> to vector<16x32xbf16>
    %c1_60 = arith.constant 1 : index
    %c0_61 = arith.constant 0 : index
    %c0_62 = arith.constant 0 : index
    %136 = vector.load %arg3[%c1_60, %c0_61, %c0_62] : memref<2x32x96xbf16, #tpu.memory_space<vmem>>, vector<1x32x96xbf16>
    %137 = vector.shape_cast %136 : vector<1x32x96xbf16> to vector<32x96xbf16>
    %cst_63 = arith.constant dense<0.000000e+00> : vector<16x96xf32>
    %138 = tpu.matmul %135, %137, %cst_63 {dimension_numbers = #tpu.dot_dimension_numbers<[1], [0], [0], [1], [0, 0, 1, 1], [], []>} : vector<16x32xbf16>, vector<32x96xbf16>, vector<16x96xf32> -> vector<16x96xf32>
    %c1_64 = arith.constant 1 : index
    %c0_65 = arith.constant 0 : index
    %c0_66 = arith.constant 0 : index
    %139 = vector.load %arg4[%c1_64, %c0_65, %c0_66] : memref<2x1x96xf32, #tpu.memory_space<vmem>>, vector<1x1x96xf32>
    %140 = vector.shape_cast %139 : vector<1x1x96xf32> to vector<1x96xf32>
    %141 = vector.broadcast %140 : vector<1x96xf32> to vector<16x96xf32>
    %142 = arith.addf %138, %141 : vector<16x96xf32>
    %143 = vector.extract_strided_slice %142 {offsets = [0, 0], sizes = [16, 8], strides = [1, 1]} : vector<16x96xf32> to vector<16x8xf32>
    %144 = vector.extract_strided_slice %142 {offsets = [0, 8], sizes = [16, 8], strides = [1, 1]} : vector<16x96xf32> to vector<16x8xf32>
    %145 = vector.extract_strided_slice %142 {offsets = [0, 16], sizes = [16, 8], strides = [1, 1]} : vector<16x96xf32> to vector<16x8xf32>
    %146 = vector.extract_strided_slice %142 {offsets = [0, 24], sizes = [16, 8], strides = [1, 1]} : vector<16x96xf32> to vector<16x8xf32>
    %147 = tpu.concatenate %143, %144, %145, %146 in 0 : vector<16x8xf32>, vector<16x8xf32>, vector<16x8xf32>, vector<16x8xf32> -> vector<64x8xf32>
    %148 = arith.truncf %147 : vector<64x8xf32> to vector<64x8xbf16>
    %149 = vector.extract_strided_slice %142 {offsets = [0, 32], sizes = [16, 8], strides = [1, 1]} : vector<16x96xf32> to vector<16x8xf32>
    %150 = vector.extract_strided_slice %142 {offsets = [0, 40], sizes = [16, 8], strides = [1, 1]} : vector<16x96xf32> to vector<16x8xf32>
    %151 = vector.extract_strided_slice %142 {offsets = [0, 48], sizes = [16, 8], strides = [1, 1]} : vector<16x96xf32> to vector<16x8xf32>
    %152 = vector.extract_strided_slice %142 {offsets = [0, 56], sizes = [16, 8], strides = [1, 1]} : vector<16x96xf32> to vector<16x8xf32>
    %153 = tpu.concatenate %149, %150, %151, %152 in 0 : vector<16x8xf32>, vector<16x8xf32>, vector<16x8xf32>, vector<16x8xf32> -> vector<64x8xf32>
    %154 = arith.truncf %153 : vector<64x8xf32> to vector<64x8xbf16>
    %155 = vector.extract_strided_slice %142 {offsets = [0, 64], sizes = [16, 8], strides = [1, 1]} : vector<16x96xf32> to vector<16x8xf32>
    %156 = vector.extract_strided_slice %142 {offsets = [0, 72], sizes = [16, 8], strides = [1, 1]} : vector<16x96xf32> to vector<16x8xf32>
    %157 = vector.extract_strided_slice %142 {offsets = [0, 80], sizes = [16, 8], strides = [1, 1]} : vector<16x96xf32> to vector<16x8xf32>
    %158 = vector.extract_strided_slice %142 {offsets = [0, 88], sizes = [16, 8], strides = [1, 1]} : vector<16x96xf32> to vector<16x8xf32>
    %159 = tpu.concatenate %155, %156, %157, %158 in 0 : vector<16x8xf32>, vector<16x8xf32>, vector<16x8xf32>, vector<16x8xf32> -> vector<64x8xf32>
    %160 = arith.truncf %159 : vector<64x8xf32> to vector<64x8xbf16>
    %cst_67 = arith.constant dense<0.000000e+00> : vector<64x64xf32>
    %161 = tpu.matmul %148, %154, %cst_67 {dimension_numbers = #tpu.dot_dimension_numbers<[1], [1], [0], [0], [0, 0, 1, 0], [], []>} : vector<64x8xbf16>, vector<64x8xbf16>, vector<64x64xf32> -> vector<64x64xf32>
    %162 = arith.addf %161, %9 : vector<64x64xf32>
    %cst_68 = arith.constant dense<0xFF800000> : vector<64xf32>
    %163 = vector.multi_reduction <maximumf>, %162, %cst_68 [1] : vector<64x64xf32> to vector<64xf32>
    %164 = vector.shape_cast %163 : vector<64xf32> to vector<64x1xf32>
    %165 = vector.broadcast %164 : vector<64x1xf32> to vector<64x64xf32>
    %166 = arith.subf %162, %165 : vector<64x64xf32>
    %167 = math.exp %166 : vector<64x64xf32>
    %cst_69 = arith.constant dense<0.000000e+00> : vector<64xf32>
    %168 = vector.multi_reduction <add>, %167, %cst_69 [1] : vector<64x64xf32> to vector<64xf32>
    %169 = vector.shape_cast %168 : vector<64xf32> to vector<64x1xf32>
    %170 = tpu.reciprocal %169 {approx = true} : vector<64x1xf32> -> vector<64x1xf32>
    %171 = vector.broadcast %170 : vector<64x1xf32> to vector<64x64xf32>
    %172 = arith.mulf %167, %171 : vector<64x64xf32>
    %173 = arith.truncf %172 : vector<64x64xf32> to vector<64x64xbf16>
    %cst_70 = arith.constant dense<0.000000e+00> : vector<64x8xf32>
    %174 = tpu.matmul %173, %160, %cst_70 {dimension_numbers = #tpu.dot_dimension_numbers<[1], [0], [0], [1], [0, 0, 1, 1], [], []>} : vector<64x64xbf16>, vector<64x8xbf16>, vector<64x8xf32> -> vector<64x8xf32>
    %175 = vector.extract_strided_slice %174 {offsets = [0, 0], sizes = [16, 8], strides = [1, 1]} : vector<64x8xf32> to vector<16x8xf32>
    %176 = vector.extract_strided_slice %174 {offsets = [16, 0], sizes = [16, 8], strides = [1, 1]} : vector<64x8xf32> to vector<16x8xf32>
    %177 = vector.extract_strided_slice %174 {offsets = [32, 0], sizes = [16, 8], strides = [1, 1]} : vector<64x8xf32> to vector<16x8xf32>
    %178 = vector.extract_strided_slice %174 {offsets = [48, 0], sizes = [16, 8], strides = [1, 1]} : vector<64x8xf32> to vector<16x8xf32>
    %179 = tpu.concatenate %175, %176, %177, %178 in 1 : vector<16x8xf32>, vector<16x8xf32>, vector<16x8xf32>, vector<16x8xf32> -> vector<16x32xf32>
    %180 = arith.truncf %179 : vector<16x32xf32> to vector<16x32xbf16>
    %c1_71 = arith.constant 1 : index
    %c0_72 = arith.constant 0 : index
    %c0_73 = arith.constant 0 : index
    %181 = vector.load %arg5[%c1_71, %c0_72, %c0_73] : memref<2x32x32xbf16, #tpu.memory_space<vmem>>, vector<1x32x32xbf16>
    %182 = vector.shape_cast %181 : vector<1x32x32xbf16> to vector<32x32xbf16>
    %cst_74 = arith.constant dense<0.000000e+00> : vector<16x32xf32>
    %183 = tpu.matmul %180, %182, %cst_74 {dimension_numbers = #tpu.dot_dimension_numbers<[1], [0], [0], [1], [0, 0, 1, 1], [], []>} : vector<16x32xbf16>, vector<32x32xbf16>, vector<16x32xf32> -> vector<16x32xf32>
    %c1_75 = arith.constant 1 : index
    %c0_76 = arith.constant 0 : index
    %c0_77 = arith.constant 0 : index
    %184 = vector.load %arg6[%c1_75, %c0_76, %c0_77] : memref<2x1x32xf32, #tpu.memory_space<vmem>>, vector<1x1x32xf32>
    %185 = vector.shape_cast %184 : vector<1x1x32xf32> to vector<1x32xf32>
    %186 = vector.broadcast %185 : vector<1x32xf32> to vector<16x32xf32>
    %187 = arith.addf %183, %186 : vector<16x32xf32>
    %188 = arith.addf %134, %187 : vector<16x32xf32>
    %cst_78 = arith.constant dense<0.000000e+00> : vector<16xf32>
    %189 = vector.multi_reduction <add>, %188, %cst_78 [1] : vector<16x32xf32> to vector<16xf32>
    %190 = vector.shape_cast %189 : vector<16xf32> to vector<16x1xf32>
    %cst_79 = arith.constant 3.200000e+01 : f32
    %191 = vector.broadcast %cst_79 : f32 to vector<16x1xf32>
    %192 = arith.divf %190, %191 : vector<16x1xf32>
    %193 = vector.broadcast %192 : vector<16x1xf32> to vector<16x32xf32>
    %194 = arith.subf %188, %193 : vector<16x32xf32>
    %195 = arith.mulf %194, %194 : vector<16x32xf32>
    %cst_80 = arith.constant dense<0.000000e+00> : vector<16xf32>
    %196 = vector.multi_reduction <add>, %195, %cst_80 [1] : vector<16x32xf32> to vector<16xf32>
    %197 = vector.shape_cast %196 : vector<16xf32> to vector<16x1xf32>
    %cst_81 = arith.constant 3.200000e+01 : f32
    %198 = vector.broadcast %cst_81 : f32 to vector<16x1xf32>
    %199 = arith.divf %197, %198 : vector<16x1xf32>
    %200 = vector.broadcast %192 : vector<16x1xf32> to vector<16x32xf32>
    %201 = arith.subf %188, %200 : vector<16x32xf32>
    %cst_82 = arith.constant 9.99999974E-6 : f32
    %202 = vector.broadcast %cst_82 : f32 to vector<16x1xf32>
    %203 = arith.addf %199, %202 : vector<16x1xf32>
    %204 = math.rsqrt %203 : vector<16x1xf32>
    %205 = vector.broadcast %204 : vector<16x1xf32> to vector<16x32xf32>
    %206 = arith.mulf %201, %205 : vector<16x32xf32>
    %c1_83 = arith.constant 1 : index
    %c0_84 = arith.constant 0 : index
    %c0_85 = arith.constant 0 : index
    %207 = vector.load %arg11[%c1_83, %c0_84, %c0_85] : memref<2x1x32xf32, #tpu.memory_space<vmem>>, vector<1x1x32xf32>
    %208 = vector.shape_cast %207 : vector<1x1x32xf32> to vector<1x32xf32>
    %209 = vector.broadcast %208 : vector<1x32xf32> to vector<16x32xf32>
    %210 = arith.mulf %206, %209 : vector<16x32xf32>
    %c1_86 = arith.constant 1 : index
    %c0_87 = arith.constant 0 : index
    %c0_88 = arith.constant 0 : index
    %211 = vector.load %arg12[%c1_86, %c0_87, %c0_88] : memref<2x1x32xf32, #tpu.memory_space<vmem>>, vector<1x1x32xf32>
    %212 = vector.shape_cast %211 : vector<1x1x32xf32> to vector<1x32xf32>
    %213 = vector.broadcast %212 : vector<1x32xf32> to vector<16x32xf32>
    %214 = arith.addf %210, %213 : vector<16x32xf32>
    %215 = arith.truncf %214 : vector<16x32xf32> to vector<16x32xbf16>
    %c1_89 = arith.constant 1 : index
    %c0_90 = arith.constant 0 : index
    %c0_91 = arith.constant 0 : index
    %216 = vector.load %arg7[%c1_89, %c0_90, %c0_91] : memref<2x32x64xbf16, #tpu.memory_space<vmem>>, vector<1x32x64xbf16>
    %217 = vector.shape_cast %216 : vector<1x32x64xbf16> to vector<32x64xbf16>
    %cst_92 = arith.constant dense<0.000000e+00> : vector<16x64xf32>
    %218 = tpu.matmul %215, %217, %cst_92 {dimension_numbers = #tpu.dot_dimension_numbers<[1], [0], [0], [1], [0, 0, 1, 1], [], []>} : vector<16x32xbf16>, vector<32x64xbf16>, vector<16x64xf32> -> vector<16x64xf32>
    %c1_93 = arith.constant 1 : index
    %c0_94 = arith.constant 0 : index
    %c0_95 = arith.constant 0 : index
    %219 = vector.load %arg8[%c1_93, %c0_94, %c0_95] : memref<2x1x64xf32, #tpu.memory_space<vmem>>, vector<1x1x64xf32>
    %220 = vector.shape_cast %219 : vector<1x1x64xf32> to vector<1x64xf32>
    %221 = vector.broadcast %220 : vector<1x64xf32> to vector<16x64xf32>
    %222 = arith.addf %218, %221 : vector<16x64xf32>
    %cst_96 = arith.constant 0.000000e+00 : f32
    %223 = vector.broadcast %cst_96 : f32 to vector<16x64xf32>
    %224 = arith.maximumf %222, %223 : vector<16x64xf32>
    %225 = arith.truncf %224 : vector<16x64xf32> to vector<16x64xbf16>
    %c1_97 = arith.constant 1 : index
    %c0_98 = arith.constant 0 : index
    %c0_99 = arith.constant 0 : index
    %226 = vector.load %arg9[%c1_97, %c0_98, %c0_99] : memref<2x64x32xbf16, #tpu.memory_space<vmem>>, vector<1x64x32xbf16>
    %227 = vector.shape_cast %226 : vector<1x64x32xbf16> to vector<64x32xbf16>
    %cst_100 = arith.constant dense<0.000000e+00> : vector<16x32xf32>
    %228 = tpu.matmul %225, %227, %cst_100 {dimension_numbers = #tpu.dot_dimension_numbers<[1], [0], [0], [1], [0, 0, 1, 1], [], []>} : vector<16x64xbf16>, vector<64x32xbf16>, vector<16x32xf32> -> vector<16x32xf32>
    %c1_101 = arith.constant 1 : index
    %c0_102 = arith.constant 0 : index
    %c0_103 = arith.constant 0 : index
    %229 = vector.load %arg10[%c1_101, %c0_102, %c0_103] : memref<2x1x32xf32, #tpu.memory_space<vmem>>, vector<1x1x32xf32>
    %230 = vector.shape_cast %229 : vector<1x1x32xf32> to vector<1x32xf32>
    %231 = vector.broadcast %230 : vector<1x32xf32> to vector<16x32xf32>
    %232 = arith.addf %228, %231 : vector<16x32xf32>
    %233 = arith.addf %214, %232 : vector<16x32xf32>
    %cst_104 = arith.constant dense<0.000000e+00> : vector<16xf32>
    %234 = vector.multi_reduction <add>, %233, %cst_104 [1] : vector<16x32xf32> to vector<16xf32>
    %235 = vector.shape_cast %234 : vector<16xf32> to vector<16x1xf32>
    %cst_105 = arith.constant 3.200000e+01 : f32
    %236 = vector.broadcast %cst_105 : f32 to vector<16x1xf32>
    %237 = arith.divf %235, %236 : vector<16x1xf32>
    %238 = vector.broadcast %237 : vector<16x1xf32> to vector<16x32xf32>
    %239 = arith.subf %233, %238 : vector<16x32xf32>
    %240 = arith.mulf %239, %239 : vector<16x32xf32>
    %cst_106 = arith.constant dense<0.000000e+00> : vector<16xf32>
    %241 = vector.multi_reduction <add>, %240, %cst_106 [1] : vector<16x32xf32> to vector<16xf32>
    %242 = vector.shape_cast %241 : vector<16xf32> to vector<16x1xf32>
    %cst_107 = arith.constant 3.200000e+01 : f32
    %243 = vector.broadcast %cst_107 : f32 to vector<16x1xf32>
    %244 = arith.divf %242, %243 : vector<16x1xf32>
    %245 = vector.broadcast %237 : vector<16x1xf32> to vector<16x32xf32>
    %246 = arith.subf %233, %245 : vector<16x32xf32>
    %cst_108 = arith.constant 9.99999974E-6 : f32
    %247 = vector.broadcast %cst_108 : f32 to vector<16x1xf32>
    %248 = arith.addf %244, %247 : vector<16x1xf32>
    %249 = math.rsqrt %248 : vector<16x1xf32>
    %250 = vector.broadcast %249 : vector<16x1xf32> to vector<16x32xf32>
    %251 = arith.mulf %246, %250 : vector<16x32xf32>
    %c1_109 = arith.constant 1 : index
    %c0_110 = arith.constant 0 : index
    %c0_111 = arith.constant 0 : index
    %252 = vector.load %arg13[%c1_109, %c0_110, %c0_111] : memref<2x1x32xf32, #tpu.memory_space<vmem>>, vector<1x1x32xf32>
    %253 = vector.shape_cast %252 : vector<1x1x32xf32> to vector<1x32xf32>
    %254 = vector.broadcast %253 : vector<1x32xf32> to vector<16x32xf32>
    %255 = arith.mulf %251, %254 : vector<16x32xf32>
    %c1_112 = arith.constant 1 : index
    %c0_113 = arith.constant 0 : index
    %c0_114 = arith.constant 0 : index
    %256 = vector.load %arg14[%c1_112, %c0_113, %c0_114] : memref<2x1x32xf32, #tpu.memory_space<vmem>>, vector<1x1x32xf32>
    %257 = vector.shape_cast %256 : vector<1x1x32xf32> to vector<1x32xf32>
    %258 = vector.broadcast %257 : vector<1x32xf32> to vector<16x32xf32>
    %259 = arith.addf %255, %258 : vector<16x32xf32>
    %c0_115 = arith.constant 0 : index
    %c0_116 = arith.constant 0 : index
    %260 = vector.load %arg15[%c0_115, %c0_116] : memref<16x32xf32, #tpu.memory_space<vmem>>, vector<16x32xf32>
    tpu.vector_store %arg15[%c0_115, %c0_116], %259 {strides = array<i32>} : memref<16x32xf32, #tpu.memory_space<vmem>>, vector<16x32xf32>,
    return
  }
}

</mosaic_0001>

<bundles_post_ra>
// kernel: tpu_custom_call.1
= control target key start
LH: loop header
LB: loop body
LE: loop exit
PB: predicated region body
PF: predicated region fallthrough
CT: control target
= control target key end

     0   :  { %20 = vsyncpa [#allocation3], 0  ;;  %s2271_s0 = inlined_call_operand.hbm [shape: f32[16,32], index: 0, kind: input, shape index: {}]   ;;  %s2272_s1 = inlined_call_operand.hbm [shape: f32[2,32], index: 1, kind: input, shape index: {}]   ;;  %s2273_s2 = inlined_call_operand.vmem [shape: f32[64,64], index: 2, kind: input, shape index: {}]   ;;  %s2274_s3 = inlined_call_operand.vmem [shape: bf16[2,32,96], index: 3, kind: input, shape index: {}]   ;;  %s2275_s4 = inlined_call_operand.vmem [shape: f32[2,1,96], index: 4, kind: input, shape index: {}]   ;;  %s2276_s5 = inlined_call_operand.hbm [shape: bf16[2,32,32], index: 5, kind: input, shape index: {}]   ;;  %s2277_s6 = inlined_call_operand.vmem [shape: f32[2,1,32], index: 6, kind: input, shape index: {}]   ;;  %s2278_s7 = inlined_call_operand.hbm [shape: bf16[2,32,64], index: 7, kind: input, shape index: {}]   ;;  %s2279_s8 = inlined_call_operand.vmem [shape: f32[2,1,64], index: 8, kind: input, shape index: {}]   ;;  %s2280_s9 = inlined_call_operand.vmem [shape: bf16[2,64,32], index: 9, kind: input, shape index: {}]   ;;  %s2281_s10 = inlined_call_operand.vmem [shape: f32[2,1,32], index: 10, kind: input, shape index: {}]   ;;  %s2282_s11 = inlined_call_operand.hbm [shape: f32[2,1,32], index: 11, kind: input, shape index: {}]   ;;  %s2283_s12 = inlined_call_operand.vmem [shape: f32[2,1,32], index: 12, kind: input, shape index: {}]   ;;  %s2284_s13 = inlined_call_operand.hbm [shape: f32[2,1,32], index: 13, kind: input, shape index: {}]   ;;  %s2285_s14 = inlined_call_operand.vmem [shape: f32[2,1,32], index: 14, kind: input, shape index: {}]   ;;  %s2286_s15 = inlined_call_operand.hbm [shape: f32[16,32], index: 15, kind: output, shape index: {}]  }
   0x1   :  { %21 = vsyncpa [#allocation6], 0 }
   0x2   :  { %22 = vsyncpa [#allocation9], 0 }
   0x3   :  { %23 = vsyncpa [#allocation12], 0  ;;  %s43_s20 = sshll.u32 %s2272_s1, 4  ;;  %s44_s20 = int_to_ptr.hbm [resolvable:$true] %s43_s20 }
   0x4   :  { %24 = vsyncpa [#allocation4], 0  ;;  %s1807_s21 = smov [#allocation5]   ;;  %s74_s25 = sshll.u32 %s2278_s7, 4  ;;  %s75_s25 = int_to_ptr.hbm [resolvable:$true] %s74_s25 }
   0x5   :  { %s45_s22 = sshll.u32 %s1807_s21, 4  ;;  %s1808_s26 = smov [#allocation8]   ;;  %s46_s22 = int_to_ptr.vmem [resolvable:$true] %s45_s22 }
   0x6   :  { %48 = dma.hbm_to_vmem [thread:$0]  %s44_s20, 32, %s46_s22, [#allocation6]  }
   0x7   :  { %s76_s27 = sshll.u32 %s1808_s26, 4  ;;  %s29_s30 = sshll.u32 %s2271_s0, 4  ;;  %s77_s27 = int_to_ptr.vmem [resolvable:$true] %s76_s27  ;;  %s30_s30 = int_to_ptr.hbm [resolvable:$true] %s29_s30 }
   0x8   :  { %s1809_s1 = smov 64   ;;  %s1810_s16 = smov 4  }
   0x9   :  { %82 = dma.hbm_to_vmem [thread:$0]  %s75_s25, 512, %s77_s27, [#allocation9], %s1809_s1, %s1809_s1, %s1810_s16  }
   0xa   :  { %s1811_s17 = smov [#allocation2]   ;;  %s59_s7 = sshll.u32 %s2276_s5, 4  ;;  %s60_s7 = int_to_ptr.hbm [resolvable:$true] %s59_s7 }
   0xb   :  { %s31_s18 = sshll.u32 %s1811_s17, 4  ;;  %s1812_s21 = smov 128   ;;  %s32_s18 = int_to_ptr.vmem [resolvable:$true] %s31_s18 }
   0xc   :  { %s1813_s22 = smov 8   ;;  %s1814_s0 = smov [#allocation7]  }
   0xd   :  { %37 = dma.hbm_to_vmem [thread:$0]  %s30_s30, 256, %s32_s18, [#allocation3], %s1812_s21, %s1812_s21, %s1813_s22  }
   0xe   :  { %s61_s23 = sshll.u32 %s1814_s0, 4  ;;  %s93_s25 = sshll.u32 %s2282_s11, 4  ;;  %s62_s23 = int_to_ptr.vmem [resolvable:$true] %s61_s23  ;;  %s94_s25 = int_to_ptr.hbm [resolvable:$true] %s93_s25 }
   0xf   :  { %67 = dma.hbm_to_vmem [thread:$0]  %s60_s7, 512, %s62_s23, [#allocation6], %s1809_s1, %s1809_s1, %s1810_s16  }
  0x10   :  { %s1815_s27 = smov [#allocation10]   ;;  %s108_s17 = sshll.u32 %s2284_s13, 4  ;;  %s109_s17 = int_to_ptr.hbm [resolvable:$true] %s108_s17 }
  0x11   :  { %s95_s5 = sshll.u32 %s1815_s27, 4  ;;  %s1816_s30 = smov 16   ;;  %s96_s5 = int_to_ptr.vmem [resolvable:$true] %s95_s5 }
  0x12   :  { %s1817_s18 = smov 1   ;;  %s1818_s19 = smov [#allocation11]  }
  0x13   :  { %101 = dma.hbm_to_vmem [thread:$0]  %s94_s25, 32, %s96_s5, [#allocation9], %s1816_s30, %s1816_s30, %s1817_s18  }
  0x14   :  { %s110_s11 = sshll.u32 %s1818_s19, 4  ;;  %s111_s11 = int_to_ptr.vmem [resolvable:$true] %s110_s11 }
  0x15   :  { %116 = dma.hbm_to_vmem [thread:$0]  %s109_s17, 32, %s111_s11, [#allocation12], %s1816_s30, %s1816_s30, %s1817_s18  }
  0x16   :  { %1797 = dma.done.wait [#allocation3], 256  }
  0x17   :  { %1798 = vsyncadd [#allocation3], 4294967040 }
  0x18   :  { %1799 = dma.done.wait [#allocation6], 544  }
  0x19   :  { %1800 = vsyncadd [#allocation6], 4294966752 }
  0x1a   :  { %1801 = dma.done.wait [#allocation9], 544  }
  0x1b   :  { %1802 = vsyncadd [#allocation9], 4294966752 }
  0x1c   :  { %1803 = dma.done.wait [#allocation12], 32  }
  0x1d   :  { %1804 = vsyncadd [#allocation12], 4294967264  ;;  %v1431_v0 = vld [vmem:[%s2274_s3 + $0x8] sm:$0xff]  ;;  %v1430_v1 = vld [vmem:[%s2274_s3] sm:$0xff]  ;;  %vm181_vm0 = vcmask 261120   ;;  %s1819_s24 = smov 120  }
  0x1e   :  { %v1529_v2 = vld [vmem:[#allocation5] ss:$0 sm:$0xff]  ;;  %v1530_v3 = vld [vmem:[#allocation5 + $0x1] ss:$0 sm:$0xff]  ;;  %191 = vmatpush.bf16.msra.mxu0 %v1431_v0  ;;  %v148_v4 = vld [vmem:[#allocation2] sm:$0xff]  ;;  %s1820_s26 = smov 104  }
  0x1f   :  { %v149_v5 = vld [vmem:[#allocation2 + $0x8] sm:$0xff]  ;;  %v1941_v6 = vadd.f32 %v1529_v2, %v148_v4  ;;  %v1531_v10 = vld [vmem:[%s2275_s4] ss:$0 sm:$0xff]  ;;  %s1821_s25 = smov 112   ;;  %s1822_s27 = smov 96   ;;  %vm235_vm1 = vcmask 64512  }
  0x20   :  { %v1943_v7 = vadd.f32 %v1530_v3, %v149_v5  ;;  %v1982_v37 = vld [vmem:[%s2273_s2] sm:$0xff]  ;;  %vm289_vm2 = vcmask 523264   ;;  %v1989_v41 = vld [vmem:[%s2273_s2 + $0x8] sm:$0xff]  ;;  %v1996_v45 = vld [vmem:[%s2273_s2 + $0x10] sm:$0xff]  ;;  %vm461_vm3 = vcmask 130048   ;;  %vm464_vm4 = vcmask 195584  }
  0x21   :  { %v2003_v49 = vld [vmem:[%s2273_s2 + $0x18] sm:$0xff]  ;;  %v2010_v53 = vld [vmem:[%s2273_s2 + $0x20] sm:$0xff]  ;;  %v2017_v57 = vld [vmem:[%s2273_s2 + $0x28] sm:$0xff]  ;;  %s1292_s20 = sshll.u32 %s2286_s15, 4  ;;  %s1293_s20 = int_to_ptr.hbm [resolvable:$true] %s1292_s20 }
  0x22   :  { %v160_v8 = vpack.c.bf16 %v1943_v7, %v1941_v6  ;;  %192 = vmatpush.bf16.msra.mxu0 %v1430_v1  ;;  %v2024_v61 = vld [vmem:[%s2273_s2 + $0x30] sm:$0xff]  ;;  %v2031_v1 = vld [vmem:[%s2273_s2 + $0x38] sm:$0xff]  ;;  %s1823_s2 = smov 24  }
  0x25   :  { %1316 = vmatmul.msk.bf16.vlgmr.msra.gmra.mxu0 %vm181_vm0, %v160_v8 }
  0xa2   :  { %v194_v9 = vpop.f32.mrf.mxu0 }
  0xa3   :  { %v195_v12 = vadd.f32 %v1531_v10, %v194_v9 }
  0xaa   :  { %v196_v11 = vpop.f32.mrf.mxu0 }
  0xab   :  { %v197_v13 = vadd.f32 %v1531_v10, %v196_v11 }
  0xad   :  { %v1479_v14 = vpack.i.bf16 %v197_v13, %v195_v12  ;;  %v1954_v15 = vpack.c.bf16 %v197_v13, %v195_v12 }
  0xaf   :  { %1480 = vrot.lane.b32.xlu1 %v1479_v14, %s1819_s24  ;;  %1470 = vrot.lane.b32.xlu0 %v1479_v14, %s1820_s26 }
  0xb7   :  { %1475 = vrot.lane.b32.xlu0 %v1479_v14, %s1821_s25 }
  0xbf   :  { %227 = vrot.lane.b32.xlu0 %v1954_v15, %s1822_s27 }
 0x121   :  { %v1471_v16 = vpop.permute.xlu0 %1470  ;;  %v1481_v24 = vpop.permute.xlu1 %1480 }
 0x122   :  { %v1473_v17 = vunpack.i.h.bf16 %v1471_v16  ;;  %v1472_v18 = vunpack.i.l.bf16 %v1471_v16  ;;  %v1483_v25 = vunpack.i.h.bf16 %v1481_v24  ;;  %v1482_v26 = vunpack.i.l.bf16 %v1481_v24 }
 0x124   :  { %v222_v19 = vpack.c.bf16 %v1473_v17, %v1472_v18  ;;  %v1963_v27 = vpack.c.bf16 %v1483_v25, %v1482_v26 }
 0x126   :  { %233 = vrot.lane.b32.xlu1 %v222_v19, %s1822_s27 }
 0x129   :  { %v1476_v20 = vpop.permute.xlu0 %1475 }
 0x12a   :  { %v1478_v21 = vunpack.i.h.bf16 %v1476_v20  ;;  %v1477_v22 = vunpack.i.l.bf16 %v1476_v20 }
 0x12c   :  { %v1959_v23 = vpack.c.bf16 %v1478_v21, %v1477_v22 }
 0x12e   :  { %231 = vrot.lane.b32.xlu2 %v1959_v23, %s1822_s27 }
 0x131   :  { %v228_v35 = vpop.permute.xlu0 %227 }
 0x132   :  { %v249_v36 = vsel %vm235_vm1, %v228_v35, 0 }
 0x136   :  { %229 = vrot.lane.b32.xlu2 %v1963_v27, %s1822_s27 }
 0x13e   :  { %388 = vrot.lane.b32.xlu2 %v222_v19, %s1809_s1 }
 0x188   :  { %v232_v28 = vpop.permute.xlu2 %231 }
 0x189   :  { %v255_v33 = vsel %vm235_vm1, %v232_v28, 0 }
 0x190   :  { %v230_v29 = vpop.permute.xlu2 %229 }
 0x191   :  { %v252_v34 = vsel %vm235_vm1, %v230_v29, 0 }
 0x198   :  { %v389_v30 = vpop.permute.xlu2 %388  ;;  %v234_v31 = vpop.permute.xlu1 %233 }
 0x199   :  { %410 = vmatpush.bf16.msra.mxu2 %v389_v30  ;;  %v258_v32 = vsel %vm235_vm1, %v234_v31, 0 }
 0x19a   :  { %264 = vmatpush.bf16.xpose.msra.mxu1 %v258_v32 }
 0x1a2   :  { %265 = vmatpush.bf16.xpose.msra.mxu1 %v255_v33 }
 0x1aa   :  { %266 = vmatpush.bf16.xpose.msra.mxu1 %v252_v34 }
 0x1b2   :  { %267 = vmatpush.bf16.xpose.msra.mxu1 %v249_v36 }
 0x1b9   :  { %1317 = vmatmul.msk.bf16.vlgmr.msra.gmra.mxu1 %vm235_vm1, %v1954_v15 }
 0x1c9   :  { %1318 = vmatmul.msk.bf16.gmra.mxu1 %vm235_vm1, %v1963_v27 }
 0x1d9   :  { %1319 = vmatmul.msk.bf16.gmra.mxu1 %vm235_vm1, %v1959_v23 }
 0x1e9   :  { %1320 = vmatmul.msk.bf16.gmra.mxu1 %vm235_vm1, %v222_v19 }
 0x236   :  { %v269_v38 = vpop.f32.mrf.mxu1 }
 0x237   :  { %v270_v39 = vadd.f32 %v269_v38, %v1982_v37 }
 0x239   :  { %v290_v40 = vsel %vm289_vm2, %v270_v39, -inf }
 0x23a   :  { %291 = vmax.xlane.f32.xlu1 %v290_v40 }
 0x23e   :  { %v271_v42 = vpop.f32.mrf.mxu1 }
 0x23f   :  { %v272_v43 = vadd.f32 %v271_v42, %v1989_v41 }
 0x241   :  { %v293_v44 = vsel %vm289_vm2, %v272_v43, -inf }
 0x242   :  { %294 = vmax.xlane.f32.xlu2 %v293_v44 }
 0x246   :  { %v274_v46 = vpop.f32.mrf.mxu1 }
 0x247   :  { %v275_v47 = vadd.f32 %v274_v46, %v1996_v45 }
 0x249   :  { %v296_v48 = vsel %vm289_vm2, %v275_v47, -inf }
 0x24a   :  { %297 = vmax.xlane.f32.xlu0 %v296_v48 }
 0x24e   :  { %v276_v50 = vpop.f32.mrf.mxu1 }
 0x24f   :  { %v277_v51 = vadd.f32 %v276_v50, %v2003_v49 }
 0x251   :  { %v299_v52 = vsel %vm289_vm2, %v277_v51, -inf }
 0x252   :  { %300 = vmax.xlane.f32.xlu2 %v299_v52 }
 0x256   :  { %v279_v54 = vpop.f32.mrf.mxu1 }
 0x257   :  { %v280_v55 = vadd.f32 %v279_v54, %v2010_v53 }
 0x259   :  { %v302_v56 = vsel %vm289_vm2, %v280_v55, -inf }
 0x25a   :  { %303 = vmax.xlane.f32.xlu1 %v302_v56 }
 0x25e   :  { %v281_v58 = vpop.f32.mrf.mxu1 }
 0x25f   :  { %v282_v59 = vadd.f32 %v281_v58, %v2017_v57 }
 0x261   :  { %v305_v60 = vsel %vm289_vm2, %v282_v59, -inf }
 0x262   :  { %306 = vmax.xlane.f32.xlu2 %v305_v60 }
 0x266   :  { %v284_v62 = vpop.f32.mrf.mxu1 }
 0x267   :  { %v285_v63 = vadd.f32 %v284_v62, %v2024_v61 }
 0x269   :  { %v308_v0 = vsel %vm289_vm2, %v285_v63, -inf }
 0x26a   :  { %309 = vmax.xlane.f32.xlu0 %v308_v0 }
 0x26e   :  { %v286_v2 = vpop.f32.mrf.mxu1 }
 0x26f   :  { %v287_v3 = vadd.f32 %v286_v2, %v2031_v1 }
 0x271   :  { %v311_v4 = vsel %vm289_vm2, %v287_v3, -inf }
 0x272   :  { %312 = vmax.xlane.f32.xlu1 %v311_v4 }
 0x27a   :  { %382 = vrot.lane.b32.xlu2 %v1954_v15, %s1809_s1 }
 0x2ad   :  { %v292_v5 = vpop.xlane.xlu1 %291 }
 0x2ae   :  { %v314_v8 = vsub.f32 %v270_v39, %v292_v5 }
 0x2b0   :  { %v322_v9 = vmul.f32 1.442695, %v314_v8 }
 0x2b2   :  { %1547 = vpow2.f32 %v322_v9 }
 0x2b5   :  { %v295_v10 = vpop.xlane.xlu2 %294 }
 0x2b6   :  { %v315_v11 = vsub.f32 %v272_v43, %v295_v10 }
 0x2b8   :  { %v2037_v12 = vpop.eup %1547  ;;  %v324_v13 = vmul.f32 1.442695, %v315_v11 }
 0x2b9   :  { %v338_v14 = vsel %vm289_vm2, %v2037_v12, 0.0 }
 0x2ba   :  { %1549 = vpow2.f32 %v324_v13  ;;  %339 = vadd.xlane.f32.xlu0 %v338_v14 }
 0x2bd   :  { %v298_v22 = vpop.xlane.xlu0 %297 }
 0x2be   :  { %v316_v28 = vsub.f32 %v275_v47, %v298_v22 }
 0x2c0   :  { %v1550_v16 = vpop.eup %1549  ;;  %v326_v31 = vmul.f32 1.442695, %v316_v28 }
 0x2c1   :  { %v341_v17 = vsel %vm289_vm2, %v1550_v16, 0.0 }
 0x2c2   :  { %342 = vadd.xlane.f32.xlu1 %v341_v17 }
 0x2c5   :  { %v301_v18 = vpop.xlane.xlu2 %300 }
 0x2c6   :  { %v317_v15 = vsub.f32 %v277_v51, %v301_v18 }
 0x2c8   :  { %v328_v19 = vmul.f32 1.442695, %v317_v15 }
 0x2ca   :  { %1551 = vpow2.f32 %v328_v19 }
 0x2cd   :  { %v304_v33 = vpop.xlane.xlu1 %303 }
 0x2ce   :  { %386 = vrot.lane.b32.xlu0 %v1959_v23, %s1809_s1  ;;  %v318_v35 = vsub.f32 %v280_v55, %v304_v33 }
 0x2d0   :  { %v1552_v20 = vpop.eup %1551 }
 0x2d1   :  { %v347_v21 = vsel %vm289_vm2, %v1552_v20, 0.0 }
 0x2d2   :  { %348 = vadd.xlane.f32.xlu2 %v347_v21 }
 0x2d5   :  { %v307_v23 = vpop.xlane.xlu2 %306 }
 0x2d6   :  { %v319_v32 = vsub.f32 %v282_v59, %v307_v23 }
 0x2d8   :  { %v332_v34 = vmul.f32 1.442695, %v319_v32 }
 0x2db   :  { %384 = vrot.lane.b32.xlu1 %v1963_v27, %s1809_s1  ;;  %v330_v27 = vmul.f32 1.442695, %v318_v35 }
 0x2dd   :  { %v310_v24 = vpop.xlane.xlu0 %309  ;;  %v383_v60 = vpop.permute.xlu2 %382 }
 0x2de   :  { %v320_v25 = vsub.f32 %v285_v63, %v310_v24 }
 0x2e0   :  { %v334_v26 = vmul.f32 1.442695, %v320_v25 }
 0x2e2   :  { %1553 = vpow2.f32 %v334_v26 }
 0x2e3   :  { %1555 = vpow2.f32 %v326_v31 }
 0x2e4   :  { %1557 = vpow2.f32 %v332_v34 }
 0x2e5   :  { %v313_v39 = vpop.xlane.xlu1 %312  ;;  %1559 = vpow2.f32 %v330_v27  ;;  %v1432_v27 = vld [vmem:[#allocation7] sm:$0xff] }
 0x2e6   :  { %v321_v40 = vsub.f32 %v287_v3, %v313_v39 }
 0x2e8   :  { %v2047_v29 = vpop.eup %1553  ;;  %v336_v43 = vmul.f32 1.442695, %v321_v40 }
 0x2e9   :  { %v356_v30 = vsel %vm289_vm2, %v2047_v29, 0.0  ;;  %v1556_v36 = vpop.eup %1555 }
 0x2ea   :  { %357 = vadd.xlane.f32.xlu2 %v356_v30  ;;  %v344_v38 = vsel %vm289_vm2, %v1556_v36, 0.0  ;;  %v1558_v42 = vpop.eup %1557  ;;  %1561 = vpow2.f32 %v336_v43 }
 0x2eb   :  { %v353_v44 = vsel %vm289_vm2, %v1558_v42, 0.0  ;;  %v1560_v46 = vpop.eup %1559 }
 0x2ec   :  { %v350_v47 = vsel %vm289_vm2, %v1560_v46, 0.0 }
 0x2f0   :  { %v1562_v48 = vpop.eup %1561 }
 0x2f1   :  { %v359_v50 = vsel %vm289_vm2, %v1562_v48, 0.0 }
 0x2f8   :  { %345 = vadd.xlane.f32.xlu0 %v344_v38 }
 0x300   :  { %354 = vadd.xlane.f32.xlu0 %v353_v44 }
 0x305   :  { %351 = vadd.xlane.f32.xlu1 %v350_v47 }
 0x30d   :  { %360 = vadd.xlane.f32.xlu1 %v359_v50 }
 0x32d   :  { %v340_v51 = vpop.xlane.xlu0 %339 }
 0x335   :  { %v343_v54 = vpop.xlane.xlu1 %342 }
 0x336   :  { %1563 = vrcp.f32 %v343_v54 }
 0x337   :  { %1565 = vrcp.f32 %v340_v51 }
 0x33c   :  { %v1564_v55 = vpop.eup %1563 }
 0x33d   :  { %v1566_v58 = vpop.eup %1565  ;;  %v371_v59 = vmul.f32 %v1564_v55, %v1550_v16 }
 0x33e   :  { %v370_v62 = vmul.f32 %v1566_v58, %v2037_v12 }
 0x340   :  { %v387_v52 = vpop.permute.xlu0 %386  ;;  %v378_v63 = vpack.c.bf16 %v371_v59, %v370_v62  ;;  %v1532_v59 = vld [vmem:[%s2277_s6] ss:$0 sm:$0xff] }
 0x341   :  { %411 = vmatpush.bf16.msra.mxu2 %v387_v52 }
 0x345   :  { %v349_v0 = vpop.xlane.xlu2 %348 }
 0x346   :  { %1567 = vrcp.f32 %v349_v0 }
 0x34c   :  { %v1568_v3 = vpop.eup %1567 }
 0x34d   :  { %v385_v56 = vpop.permute.xlu1 %384  ;;  %v373_v8 = vmul.f32 %v1568_v3, %v1552_v20 }
 0x34e   :  { %412 = vmatpush.bf16.msra.mxu2 %v385_v56 }
 0x352   :  { %413 = vmatpush.bf16.msra.mxu2 %v383_v60 }
 0x355   :  { %1321 = vmatmul.msk.bf16.vlgmr.msra.gmra.mxu2 %vm289_vm2, %v378_v63 }
 0x35d   :  { %v358_v15 = vpop.xlane.xlu2 %357 }
 0x36b   :  { %v346_v2 = vpop.xlane.xlu0 %345 }
 0x36c   :  { %1569 = vrcp.f32 %v346_v2 }
 0x372   :  { %v1570_v4 = vpop.eup %1569 }
 0x373   :  { %v372_v5 = vmul.f32 %v1570_v4, %v1556_v36  ;;  %v355_v10 = vpop.xlane.xlu0 %354 }
 0x375   :  { %v379_v9 = vpack.c.bf16 %v373_v8, %v372_v5  ;;  %v1824_v8 = vmov 32.0  }
 0x377   :  { %1322 = vmatmul.msk.bf16.gmra.mxu2 %vm289_vm2, %v379_v9 }
 0x378   :  { %v352_v11 = vpop.xlane.xlu1 %351 }
 0x379   :  { %1571 = vrcp.f32 %v352_v11 }
 0x37a   :  { %1573 = vrcp.f32 %v355_v10 }
 0x37f   :  { %v1572_v12 = vpop.eup %1571 }
 0x380   :  { %v1574_v13 = vpop.eup %1573  ;;  %v374_v14 = vmul.f32 %v1572_v12, %v1560_v46  ;;  %v361_v17 = vpop.xlane.xlu1 %360 }
 0x381   :  { %v375_v16 = vmul.f32 %v1574_v13, %v1558_v42  ;;  %1575 = vrcp.f32 %v361_v17 }
 0x382   :  { %1577 = vrcp.f32 %v358_v15 }
 0x383   :  { %v380_v18 = vpack.c.bf16 %v375_v16, %v374_v14  ;;  %1579 = vrcp.f32 %v1824_v8 }
 0x387   :  { %1323 = vmatmul.msk.bf16.gmra.mxu2 %vm289_vm2, %v380_v18  ;;  %v1576_v19 = vpop.eup %1575 }
 0x388   :  { %v1578_v20 = vpop.eup %1577  ;;  %v377_v21 = vmul.f32 %v1576_v19, %v1562_v48 }
 0x389   :  { %v376_v22 = vmul.f32 %v1578_v20, %v2047_v29  ;;  %v1433_v29 = vld [vmem:[#allocation7 + $0x8] sm:$0xff]  ;;  %v1580_v9 = vpop.eup %1579 }
 0x38a   :  { %497 = vmatpush.bf16.msra.mxu3 %v1433_v29  ;;  %v514_v10 = vmul.f32 32.0, %v1580_v9  ;;  %vm518_vm5 = vweird.f32 %v1580_v9 }
 0x38b   :  { %v381_v24 = vpack.c.bf16 %v377_v21, %v376_v22 }
 0x38c   :  { %v515_v11 = vsub.f32 1.0, %v514_v10 }
 0x38e   :  { %498 = vmatpush.bf16.msra.mxu3 %v1432_v27  ;;  %v516_v12 = vmul.f32 %v1580_v9, %v515_v11 }
 0x390   :  { %v517_v13 = vadd.f32 %v1580_v9, %v516_v12  ;;  %v1536_v12 = vld [vmem:[%s2281_s10] ss:$0 sm:$0xff] }
 0x392   :  { %v2078_v14 = vsel %vm518_vm5, %v1580_v9, %v517_v13 }
 0x397   :  { %1324 = vmatmul.msk.bf16.gmra.mxu2 %vm289_vm2, %v381_v24  ;;  %v1435_v24 = vld [vmem:[#allocation8 + $0x8] sm:$0xff] }
 0x398   :  { %600 = vmatpush.bf16.msrb.mxu0 %v1435_v24 }
 0x3d8   :  { %v415_v25 = vpop.f32.mrf.mxu2 }
 0x3e0   :  { %v417_v26 = vpop.f32.mrf.mxu2 }
 0x3fa   :  { %v420_v28 = vpop.f32.mrf.mxu2 }
 0x402   :  { %v422_v30 = vpop.f32.mrf.mxu2 }
 0x403   :  { %v1484_v31 = vpack.i.bf16 %v422_v30, %v420_v28 }
 0x405   :  { %1485 = vrot.lane.b32.xlu0 %v1484_v31, %s1813_s22  ;;  %v1439_v31 = vld [vmem:[%s2280_s9 + $0x18] sm:$0xff] }
 0x406   :  { %654 = vmatpush.bf16.msrb.mxu3 %v1439_v31 }
 0x40a   :  { %v425_v23 = vpop.f32.mrf.mxu2 }
 0x412   :  { %v427_v32 = vpop.f32.mrf.mxu2 }
 0x413   :  { %v1489_v33 = vpack.i.bf16 %v427_v32, %v425_v23 }
 0x415   :  { %1490 = vrot.lane.b32.xlu2 %v1489_v33, %s1816_s30 }
 0x41a   :  { %v430_v34 = vpop.f32.mrf.mxu2 }
 0x422   :  { %v432_v35 = vpop.f32.mrf.mxu2 }
 0x423   :  { %v1494_v36 = vpack.i.bf16 %v432_v35, %v430_v34 }
 0x425   :  { %1495 = vrot.lane.b32.xlu1 %v1494_v36, %s1823_s2 }
 0x46f   :  { %v1491_v42 = vpop.permute.xlu2 %1490 }
 0x470   :  { %v1493_v46 = vunpack.i.h.bf16 %v1491_v42  ;;  %v1492_v47 = vunpack.i.l.bf16 %v1491_v42 }
 0x477   :  { %v1486_v38 = vpop.permute.xlu0 %1485 }
 0x478   :  { %v1488_v39 = vunpack.i.h.bf16 %v1486_v38  ;;  %v1487_v40 = vunpack.i.l.bf16 %v1486_v38 }
 0x47a   :  { %v460_v43 = vsel %vm235_vm1, %v417_v26, %v1488_v39  ;;  %v459_v44 = vsel %vm235_vm1, %v415_v25, %v1487_v40  ;;  %v1434_v26 = vld [vmem:[#allocation8] sm:$0xff] }
 0x47b   :  { %v462_v52 = vsel %vm461_vm3, %v459_v44, %v1492_v47  ;;  %v463_v54 = vsel %vm461_vm3, %v460_v43, %v1493_v46  ;;  %601 = vmatpush.bf16.msrb.mxu0 %v1434_v26 }
 0x497   :  { %v1496_v48 = vpop.permute.xlu1 %1495 }
 0x498   :  { %v1498_v50 = vunpack.i.h.bf16 %v1496_v48  ;;  %v1497_v51 = vunpack.i.l.bf16 %v1496_v48  ;;  %v1533_v48 = vld [vmem:[#allocation10] ss:$0 sm:$0xff] }
 0x49a   :  { %v465_v55 = vsel %vm464_vm4, %v462_v52, %v1497_v51  ;;  %v466_v56 = vsel %vm464_vm4, %v463_v54, %v1498_v50 }
 0x49b   :  { %v467_v58 = vpack.c.bf16 %v466_v56, %v465_v55  ;;  %v1534_v55 = vld [vmem:[%s2283_s12] ss:$0 sm:$0xff] }
 0x49d   :  { %1333 = vmatmul.msk.bf16.vlgmr.msra.gmra.mxu3 %vm181_vm0, %v467_v58 }
 0x520   :  { %v500_v60 = vpop.f32.mrf.mxu3 }
 0x521   :  { %v501_v62 = vadd.f32 %v1532_v59, %v500_v60 }
 0x523   :  { %v505_v63 = vadd.f32 %v501_v62, %v1941_v6  ;;  %v1438_v62 = vld [vmem:[%s2280_s9 + $0x10] sm:$0xff] }
 0x524   :  { %655 = vmatpush.bf16.msrb.mxu3 %v1438_v62 }
 0x525   :  { %v507_v0 = vsel %vm181_vm0, %v505_v63, 0.0 }
 0x526   :  { %508 = vadd.xlane.f32.xlu0 %v507_v0  ;;  %v1436_v0 = vld [vmem:[%s2280_s9] sm:$0xff] }
 0x528   :  { %v502_v2 = vpop.f32.mrf.mxu3 }
 0x529   :  { %v503_v3 = vadd.f32 %v1532_v59, %v502_v2 }
 0x52b   :  { %v506_v4 = vadd.f32 %v503_v3, %v1943_v7  ;;  %v1535_v3 = vld [vmem:[%s2279_s8] ss:$0 sm:$0xff] }
 0x52d   :  { %v510_v5 = vsel %vm181_vm0, %v506_v4, 0.0 }
 0x52e   :  { %511 = vadd.xlane.f32.xlu2 %v510_v5 }
 0x599   :  { %v509_v6 = vpop.xlane.xlu0 %508 }
 0x59a   :  { %v520_v16 = vmul.f32 %v2078_v14, %v509_v6 }
 0x59c   :  { %v522_v17 = vsub.f32 %v505_v63, %v520_v16  ;;  %v1437_v63 = vld [vmem:[%s2280_s9 + $0x8] sm:$0xff] }
 0x59d   :  { %656 = vmatpush.bf16.msrb.mxu3 %v1437_v63 }
 0x59e   :  { %v524_v18 = vmul.f32 %v522_v17, %v522_v17 }
 0x5a0   :  { %v526_v7 = vsel %vm181_vm0, %v524_v18, 0.0 }
 0x5a1   :  { %v512_v15 = vpop.xlane.xlu2 %511  ;;  %527 = vadd.xlane.f32.xlu1 %v526_v7  ;;  %657 = vmatpush.bf16.msrb.mxu3 %v1436_v0 }
 0x5a2   :  { %v521_v19 = vmul.f32 %v2078_v14, %v512_v15 }
 0x5a4   :  { %v523_v20 = vsub.f32 %v506_v4, %v521_v19 }
 0x5a6   :  { %v525_v21 = vmul.f32 %v523_v20, %v523_v20 }
 0x5a8   :  { %v529_v22 = vsel %vm181_vm0, %v525_v21, 0.0 }
 0x5a9   :  { %530 = vadd.xlane.f32.xlu0 %v529_v22 }
 0x614   :  { %v528_v25 = vpop.xlane.xlu1 %527 }
 0x615   :  { %v532_v28 = vmul.f32 %v528_v25, %v2078_v14 }
 0x617   :  { %v534_v30 = vadd.f32 1e-05, %v532_v28 }
 0x619   :  { %1581 = vrsqrt.f32 %v534_v30  ;;  %vm542_vm7 = vweird.f32 %v534_v30 }
 0x61c   :  { %v531_v23 = vpop.xlane.xlu0 %530 }
 0x61d   :  { %v533_v32 = vmul.f32 %v531_v23, %v2078_v14 }
 0x61f   :  { %v1582_v33 = vpop.eup %1581  ;;  %v535_v34 = vadd.f32 1e-05, %v533_v32  ;;  %v1441_v32 = vld [vmem:[%s2274_s3 + $0x18] sm:$0xff] }
 0x620   :  { %v537_v35 = vmul.f32 %v1582_v33, %v534_v30  ;;  %vm543_vm6 = vweird.f32 %v1582_v33  ;;  %754 = vmatpush.bf16.msra.mxu0 %v1441_v32 }
 0x621   :  { %1583 = vrsqrt.f32 %v535_v34  ;;  %vm544_vm8 = vmor %vm542_vm7, %vm543_vm6  ;;  %vm552_vm10 = vweird.f32 %v535_v34 }
 0x622   :  { %v538_v36 = vmul.f32 %v1582_v33, %v537_v35  ;;  %v1440_v35 = vld [vmem:[%s2274_s3 + $0x10] sm:$0xff] }
 0x624   :  { %v539_v29 = vmul.f32 0.5, %v538_v36  ;;  %755 = vmatpush.bf16.msra.mxu0 %v1440_v35 }
 0x626   :  { %v540_v27 = vsub.f32 1.5, %v539_v29 }
 0x627   :  { %v1584_v38 = vpop.eup %1583 }
 0x628   :  { %v541_v39 = vmul.f32 %v1582_v33, %v540_v27  ;;  %v547_v40 = vmul.f32 %v1584_v38, %v535_v34  ;;  %vm553_vm9 = vweird.f32 %v1584_v38 }
 0x629   :  { %vm554_vm11 = vmor %vm552_vm10, %vm553_vm9 }
 0x62a   :  { %v548_v42 = vmul.f32 %v1584_v38, %v547_v40  ;;  %v545_v43 = vsel %vm544_vm8, %v1582_v33, %v541_v39 }
 0x62b   :  { %v556_v47 = vmul.f32 %v545_v43, %v522_v17 }
 0x62c   :  { %v549_v44 = vmul.f32 0.5, %v548_v42 }
 0x62d   :  { %v562_v54 = vmul.f32 %v1533_v48, %v556_v47 }
 0x62e   :  { %v550_v46 = vsub.f32 1.5, %v549_v44 }
 0x62f   :  { %v568_v58 = vadd.f32 %v1534_v55, %v562_v54 }
 0x630   :  { %v551_v50 = vmul.f32 %v1584_v38, %v550_v46 }
 0x632   :  { %v555_v51 = vsel %vm554_vm11, %v1584_v38, %v551_v50 }
 0x633   :  { %v557_v52 = vmul.f32 %v555_v51, %v523_v20 }
 0x635   :  { %v563_v56 = vmul.f32 %v1533_v48, %v557_v52 }
 0x637   :  { %v569_v59 = vadd.f32 %v1534_v55, %v563_v56  ;;  %v1537_v55 = vld [vmem:[#allocation11] ss:$0 sm:$0xff] }
 0x639   :  { %v570_v60 = vpack.c.bf16 %v569_v59, %v568_v58 }
 0x63b   :  { %1342 = vmatmul.msk.bf16.vlgmr.msrb.gmra.mxu0 %vm181_vm0, %v570_v60  ;;  %v1538_v60 = vld [vmem:[%s2285_s14] ss:$0 sm:$0xff] }
 0x6b8   :  { %v603_v2 = vpop.f32.mrf.mxu0 }
 0x6b9   :  { %v604_v4 = vadd.f32 %v1535_v3, %v603_v2 }
 0x6bb   :  { %v608_v9 = vmax.f32 %v604_v4, 0.0 }
 0x6c0   :  { %v605_v5 = vpop.f32.mrf.mxu0 }
 0x6c1   :  { %v606_v8 = vadd.f32 %v1535_v3, %v605_v5 }
 0x6c3   :  { %v609_v10 = vmax.f32 %v606_v8, 0.0  ;;  %v1539_v8 = vld [vmem:[%s2275_s4 + $0x1] ss:$0 sm:$0xff] }
 0x6c5   :  { %v610_v11 = vpack.c.bf16 %v609_v10, %v608_v9 }
 0x6c7   :  { %1359 = vmatmul.msk.bf16.vlgmr.msrb.gmra.mxu3 %vm289_vm2, %v610_v11 }
 0x74a   :  { %v659_v13 = vpop.f32.mrf.mxu3 }
 0x74b   :  { %v660_v6 = vadd.f32 %v1536_v12, %v659_v13 }
 0x74d   :  { %v664_v16 = vadd.f32 %v660_v6, %v568_v58 }
 0x74f   :  { %v666_v17 = vsel %vm181_vm0, %v664_v16, 0.0 }
 0x750   :  { %667 = vadd.xlane.f32.xlu2 %v666_v17 }
 0x752   :  { %v661_v18 = vpop.f32.mrf.mxu3 }
 0x753   :  { %v662_v7 = vadd.f32 %v1536_v12, %v661_v18 }
 0x755   :  { %v665_v15 = vadd.f32 %v662_v7, %v569_v59 }
 0x757   :  { %v669_v19 = vsel %vm181_vm0, %v665_v15, 0.0 }
 0x758   :  { %670 = vadd.xlane.f32.xlu0 %v669_v19 }
 0x7c3   :  { %v668_v20 = vpop.xlane.xlu2 %667 }
 0x7c4   :  { %v672_v21 = vmul.f32 %v668_v20, %v2078_v14 }
 0x7c6   :  { %v674_v22 = vsub.f32 %v664_v16, %v672_v21 }
 0x7c8   :  { %v676_v24 = vmul.f32 %v674_v22, %v674_v22 }
 0x7ca   :  { %v678_v25 = vsel %vm181_vm0, %v676_v24, 0.0 }
 0x7cb   :  { %v671_v26 = vpop.xlane.xlu0 %670  ;;  %679 = vadd.xlane.f32.xlu1 %v678_v25 }
 0x7cc   :  { %v673_v28 = vmul.f32 %v671_v26, %v2078_v14 }
 0x7ce   :  { %v675_v30 = vsub.f32 %v665_v15, %v673_v28 }
 0x7d0   :  { %v677_v31 = vmul.f32 %v675_v30, %v675_v30 }
 0x7d2   :  { %v681_v23 = vsel %vm181_vm0, %v677_v31, 0.0 }
 0x7d3   :  { %682 = vadd.xlane.f32.xlu2 %v681_v23 }
 0x83e   :  { %v680_v33 = vpop.xlane.xlu1 %679 }
 0x83f   :  { %v684_v34 = vmul.f32 %v680_v33, %v2078_v14 }
 0x841   :  { %v686_v36 = vadd.f32 1e-05, %v684_v34 }
 0x843   :  { %1585 = vrsqrt.f32 %v686_v36  ;;  %vm694_vm13 = vweird.f32 %v686_v36 }
 0x846   :  { %v683_v29 = vpop.xlane.xlu2 %682 }
 0x847   :  { %v685_v27 = vmul.f32 %v683_v29, %v2078_v14 }
 0x849   :  { %v1586_v38 = vpop.eup %1585  ;;  %v687_v39 = vadd.f32 1e-05, %v685_v27 }
 0x84a   :  { %v689_v40 = vmul.f32 %v1586_v38, %v686_v36  ;;  %vm695_vm12 = vweird.f32 %v1586_v38 }
 0x84b   :  { %1587 = vrsqrt.f32 %v687_v39  ;;  %vm696_vm14 = vmor %vm694_vm13, %vm695_vm12  ;;  %vm704_vm5 = vweird.f32 %v687_v39 }
 0x84c   :  { %v690_v42 = vmul.f32 %v1586_v38, %v689_v40 }
 0x84e   :  { %v691_v43 = vmul.f32 0.5, %v690_v42 }
 0x850   :  { %v692_v44 = vsub.f32 1.5, %v691_v43 }
 0x851   :  { %v1588_v46 = vpop.eup %1587 }
 0x852   :  { %v693_v47 = vmul.f32 %v1586_v38, %v692_v44  ;;  %v699_v48 = vmul.f32 %v1588_v46, %v687_v39  ;;  %vm705_vm15 = vweird.f32 %v1588_v46 }
 0x853   :  { %vm706_vm6 = vmor %vm704_vm5, %vm705_vm15 }
 0x854   :  { %v700_v50 = vmul.f32 %v1588_v46, %v699_v48  ;;  %v697_v51 = vsel %vm696_vm14, %v1586_v38, %v693_v47 }
 0x855   :  { %v708_v56 = vmul.f32 %v697_v51, %v674_v22 }
 0x856   :  { %v701_v52 = vmul.f32 0.5, %v700_v50 }
 0x857   :  { %v714_v62 = vmul.f32 %v1537_v55, %v708_v56 }
 0x858   :  { %v702_v54 = vsub.f32 1.5, %v701_v52 }
 0x859   :  { %v2126_v2 = vadd.f32 %v1538_v60, %v714_v62 }
 0x85a   :  { %v703_v58 = vmul.f32 %v1588_v46, %v702_v54 }
 0x85c   :  { %v707_v59 = vsel %vm706_vm6, %v1588_v46, %v703_v58 }
 0x85d   :  { %v709_v63 = vmul.f32 %v707_v59, %v675_v30 }
 0x85f   :  { %v715_v0 = vmul.f32 %v1537_v55, %v709_v63 }
 0x861   :  { %v2128_v3 = vadd.f32 %v1538_v60, %v715_v0 }
 0x863   :  { %v722_v4 = vpack.c.bf16 %v2128_v3, %v2126_v2 }
 0x865   :  { %1373 = vmatmul.msk.bf16.vlgmr.msra.gmra.mxu0 %vm181_vm0, %v722_v4 }
 0x8e2   :  { %v757_v5 = vpop.f32.mrf.mxu0 }
 0x8e3   :  { %v758_v10 = vadd.f32 %v1539_v8, %v757_v5 }
 0x8ea   :  { %v759_v9 = vpop.f32.mrf.mxu0 }
 0x8eb   :  { %v760_v11 = vadd.f32 %v1539_v8, %v759_v9 }
 0x8ed   :  { %v1509_v12 = vpack.i.bf16 %v760_v11, %v758_v10  ;;  %v2139_v13 = vpack.c.bf16 %v760_v11, %v758_v10 }
 0x8ef   :  { %1510 = vrot.lane.b32.xlu2 %v1509_v12, %s1819_s24  ;;  %1505 = vrot.lane.b32.xlu1 %v1509_v12, %s1821_s25 }
 0x8f0   :  { %1500 = vrot.lane.b32.xlu0 %v1509_v12, %s1820_s26 }
 0x8f7   :  { %790 = vrot.lane.b32.xlu2 %v2139_v13, %s1822_s27 }
 0x949   :  { %v1511_v21 = vpop.permute.xlu2 %1510 }
 0x94a   :  { %v1513_v22 = vunpack.i.h.bf16 %v1511_v21  ;;  %v1512_v24 = vunpack.i.l.bf16 %v1511_v21 }
 0x94c   :  { %v2149_v25 = vpack.c.bf16 %v1513_v22, %v1512_v24 }
 0x951   :  { %v791_v26 = vpop.permute.xlu2 %790 }
 0x952   :  { %v811_v35 = vsel %vm235_vm1, %v791_v26, 0 }
 0x961   :  { %v1506_v6 = vpop.permute.xlu1 %1505 }
 0x962   :  { %v1508_v16 = vunpack.i.h.bf16 %v1506_v6  ;;  %v1507_v17 = vunpack.i.l.bf16 %v1506_v6  ;;  %v1501_v18 = vpop.permute.xlu0 %1500 }
 0x963   :  { %v1503_v7 = vunpack.i.h.bf16 %v1501_v18  ;;  %v1502_v15 = vunpack.i.l.bf16 %v1501_v18 }
 0x964   :  { %v2143_v19 = vpack.c.bf16 %v1508_v16, %v1507_v17 }
 0x965   :  { %v785_v20 = vpack.c.bf16 %v1503_v7, %v1502_v15 }
 0x966   :  { %794 = vrot.lane.b32.xlu1 %v2143_v19, %s1822_s27 }
 0x967   :  { %796 = vrot.lane.b32.xlu0 %v785_v20, %s1822_s27  ;;  %949 = vrot.lane.b32.xlu2 %v785_v20, %s1809_s1 }
 0x96f   :  { %792 = vrot.lane.b32.xlu0 %v2149_v25, %s1822_s27 }
 0x9c1   :  { %v950_v28 = vpop.permute.xlu2 %949 }
 0x9c2   :  { %971 = vmatpush.bf16.msrb.mxu0 %v950_v28 }
 0x9d8   :  { %v795_v23 = vpop.permute.xlu1 %794 }
 0x9d9   :  { %v797_v30 = vpop.permute.xlu0 %796  ;;  %v817_v32 = vsel %vm235_vm1, %v795_v23, 0 }
 0x9da   :  { %v820_v31 = vsel %vm235_vm1, %v797_v30, 0 }
 0x9db   :  { %826 = vmatpush.bf16.xpose.msra.mxu3 %v820_v31 }
 0x9e1   :  { %v793_v33 = vpop.permute.xlu0 %792 }
 0x9e2   :  { %v814_v34 = vsel %vm235_vm1, %v793_v33, 0 }
 0x9e3   :  { %827 = vmatpush.bf16.xpose.msra.mxu3 %v817_v32 }
 0x9eb   :  { %828 = vmatpush.bf16.xpose.msra.mxu3 %v814_v34 }
 0x9f3   :  { %829 = vmatpush.bf16.xpose.msra.mxu3 %v811_v35 }
 0x9fa   :  { %1374 = vmatmul.msk.bf16.vlgmr.msra.gmra.mxu3 %vm235_vm1, %v2139_v13 }
 0xa0a   :  { %1375 = vmatmul.msk.bf16.gmra.mxu3 %vm235_vm1, %v2149_v25 }
 0xa1a   :  { %1376 = vmatmul.msk.bf16.gmra.mxu3 %vm235_vm1, %v2143_v19 }
 0xa2a   :  { %1377 = vmatmul.msk.bf16.gmra.mxu3 %vm235_vm1, %v785_v20 }
 0xa7d   :  { %v831_v36 = vpop.f32.mrf.mxu3 }
 0xa7e   :  { %v832_v29 = vadd.f32 %v831_v36, %v1982_v37 }
 0xa80   :  { %v851_v27 = vsel %vm289_vm2, %v832_v29, -inf }
 0xa81   :  { %852 = vmax.xlane.f32.xlu1 %v851_v27 }
 0xa85   :  { %v833_v38 = vpop.f32.mrf.mxu3 }
 0xa86   :  { %v834_v39 = vadd.f32 %v833_v38, %v1989_v41 }
 0xa88   :  { %v854_v40 = vsel %vm289_vm2, %v834_v39, -inf }
 0xa89   :  { %855 = vmax.xlane.f32.xlu0 %v854_v40 }
 0xa8d   :  { %v836_v42 = vpop.f32.mrf.mxu3 }
 0xa8e   :  { %v837_v43 = vadd.f32 %v836_v42, %v1996_v45 }
 0xa90   :  { %v857_v44 = vsel %vm289_vm2, %v837_v43, -inf }
 0xa91   :  { %858 = vmax.xlane.f32.xlu2 %v857_v44 }
 0xa95   :  { %v838_v46 = vpop.f32.mrf.mxu3 }
 0xa96   :  { %v839_v47 = vadd.f32 %v838_v46, %v2003_v49 }
 0xa98   :  { %v860_v37 = vsel %vm289_vm2, %v839_v47, -inf }
 0xa99   :  { %861 = vmax.xlane.f32.xlu1 %v860_v37 }
 0xa9d   :  { %v841_v48 = vpop.f32.mrf.mxu3 }
 0xa9e   :  { %v842_v50 = vadd.f32 %v841_v48, %v2010_v53 }
 0xaa0   :  { %v863_v41 = vsel %vm289_vm2, %v842_v50, -inf }
 0xaa1   :  { %864 = vmax.xlane.f32.xlu0 %v863_v41 }
 0xaa5   :  { %v843_v51 = vpop.f32.mrf.mxu3 }
 0xaa6   :  { %v844_v52 = vadd.f32 %v843_v51, %v2017_v57 }
 0xaa8   :  { %v866_v45 = vsel %vm289_vm2, %v844_v52, -inf }
 0xaa9   :  { %867 = vmax.xlane.f32.xlu2 %v866_v45 }
 0xaad   :  { %v846_v54 = vpop.f32.mrf.mxu3 }
 0xaae   :  { %v847_v55 = vadd.f32 %v846_v54, %v2024_v61 }
 0xab0   :  { %v869_v49 = vsel %vm289_vm2, %v847_v55, -inf }
 0xab1   :  { %870 = vmax.xlane.f32.xlu1 %v869_v49 }
 0xab5   :  { %v848_v56 = vpop.f32.mrf.mxu3 }
 0xab6   :  { %v849_v58 = vadd.f32 %v848_v56, %v2031_v1 }
 0xab8   :  { %v872_v53 = vsel %vm289_vm2, %v849_v58, -inf }
 0xab9   :  { %873 = vmax.xlane.f32.xlu0 %v872_v53 }
 0xac1   :  { %943 = vrot.lane.b32.xlu2 %v2139_v13, %s1809_s1 }
 0xaf4   :  { %v853_v59 = vpop.xlane.xlu1 %852 }
 0xaf5   :  { %v875_v57 = vsub.f32 %v832_v29, %v853_v59 }
 0xaf7   :  { %v883_v60 = vmul.f32 1.442695, %v875_v57 }
 0xaf9   :  { %1589 = vpow2.f32 %v883_v60 }
 0xafc   :  { %v856_v62 = vpop.xlane.xlu0 %855 }
 0xafd   :  { %v876_v63 = vsub.f32 %v834_v39, %v856_v62 }
 0xaff   :  { %v2182_v0 = vpop.eup %1589  ;;  %v885_v61 = vmul.f32 1.442695, %v876_v63 }
 0xb00   :  { %v899_v4 = vsel %vm289_vm2, %v2182_v0, 0.0 }
 0xb01   :  { %1591 = vpow2.f32 %v885_v61  ;;  %900 = vadd.xlane.f32.xlu1 %v899_v4 }
 0xb04   :  { %v859_v1 = vpop.xlane.xlu2 %858 }
 0xb05   :  { %v877_v5 = vsub.f32 %v837_v43, %v859_v1 }
 0xb07   :  { %v1592_v8 = vpop.eup %1591  ;;  %v887_v9 = vmul.f32 1.442695, %v877_v5 }
 0xb08   :  { %v902_v10 = vsel %vm289_vm2, %v1592_v8, 0.0 }
 0xb09   :  { %1593 = vpow2.f32 %v887_v9  ;;  %903 = vadd.xlane.f32.xlu0 %v902_v10 }
 0xb0c   :  { %v862_v22 = vpop.xlane.xlu1 %861 }
 0xb0d   :  { %v878_v24 = vsub.f32 %v839_v47, %v862_v22 }
 0xb0f   :  { %v1594_v11 = vpop.eup %1593  ;;  %v889_v30 = vmul.f32 1.442695, %v878_v24 }
 0xb10   :  { %v905_v12 = vsel %vm289_vm2, %v1594_v11, 0.0 }
 0xb11   :  { %906 = vadd.xlane.f32.xlu2 %v905_v12 }
 0xb14   :  { %v865_v17 = vpop.xlane.xlu0 %864 }
 0xb1a   :  { %947 = vrot.lane.b32.xlu1 %v2143_v19, %s1809_s1  ;;  %v879_v19 = vsub.f32 %v842_v50, %v865_v17 }
 0xb1c   :  { %v868_v13 = vpop.xlane.xlu2 %867  ;;  %v891_v26 = vmul.f32 1.442695, %v879_v19 }
 0xb1d   :  { %v880_v6 = vsub.f32 %v844_v52, %v868_v13  ;;  %945 = vrot.lane.b32.xlu0 %v2149_v25, %s1809_s1  ;;  %v1443_v13 = vld [vmem:[#allocation7 + $0x18] sm:$0xff] }
 0xb1e   :  { %1058 = vmatpush.bf16.msrb.mxu2 %v1443_v13 }
 0xb1f   :  { %v893_v16 = vmul.f32 1.442695, %v880_v6  ;;  %v1442_v6 = vld [vmem:[#allocation7 + $0x10] sm:$0xff] }
 0xb21   :  { %1595 = vpow2.f32 %v893_v16 }
 0xb22   :  { %1059 = vmatpush.bf16.msrb.mxu2 %v1442_v6 }
 0xb24   :  { %v871_v31 = vpop.xlane.xlu1 %870  ;;  %v944_v47 = vpop.permute.xlu2 %943 }
 0xb25   :  { %v881_v23 = vsub.f32 %v847_v55, %v871_v31 }
 0xb27   :  { %v2192_v18 = vpop.eup %1595  ;;  %v895_v33 = vmul.f32 1.442695, %v881_v23 }
 0xb28   :  { %v914_v7 = vsel %vm289_vm2, %v2192_v18, 0.0 }
 0xb29   :  { %915 = vadd.xlane.f32.xlu2 %v914_v7 }
 0xb2c   :  { %v874_v15 = vpop.xlane.xlu0 %873 }
 0xb2d   :  { %v882_v20 = vsub.f32 %v849_v58, %v874_v15 }
 0xb2f   :  { %v897_v21 = vmul.f32 1.442695, %v882_v20 }
 0xb31   :  { %1597 = vpow2.f32 %v897_v21 }
 0xb32   :  { %1599 = vpow2.f32 %v891_v26 }
 0xb33   :  { %1601 = vpow2.f32 %v889_v30 }
 0xb34   :  { %1603 = vpow2.f32 %v895_v33 }
 0xb37   :  { %v1598_v28 = vpop.eup %1597 }
 0xb38   :  { %v920_v25 = vsel %vm289_vm2, %v1598_v28, 0.0  ;;  %v1600_v32 = vpop.eup %1599 }
 0xb39   :  { %921 = vadd.xlane.f32.xlu2 %v920_v25  ;;  %v1602_v34 = vpop.eup %1601  ;;  %v911_v35 = vsel %vm289_vm2, %v1600_v32, 0.0 }
 0xb3a   :  { %v908_v36 = vsel %vm289_vm2, %v1602_v34, 0.0  ;;  %v1604_v29 = vpop.eup %1603 }
 0xb3b   :  { %v917_v27 = vsel %vm289_vm2, %v1604_v29, 0.0 }
 0xb44   :  { %912 = vadd.xlane.f32.xlu1 %v911_v35 }
 0xb47   :  { %909 = vadd.xlane.f32.xlu0 %v908_v36 }
 0xb4f   :  { %918 = vadd.xlane.f32.xlu0 %v917_v27  ;;  %v1540_v27 = vld [vmem:[%s2277_s6 + $0x1] ss:$0 sm:$0xff] }
 0xb74   :  { %v901_v38 = vpop.xlane.xlu1 %900 }
 0xb7c   :  { %v904_v39 = vpop.xlane.xlu0 %903 }
 0xb7d   :  { %1605 = vrcp.f32 %v904_v39 }
 0xb7e   :  { %1607 = vrcp.f32 %v901_v38 }
 0xb83   :  { %v1606_v42 = vpop.eup %1605 }
 0xb84   :  { %v1608_v44 = vpop.eup %1607  ;;  %v932_v46 = vmul.f32 %v1606_v42, %v1592_v8  ;;  %v907_v50 = vpop.xlane.xlu2 %906 }
 0xb85   :  { %v931_v37 = vmul.f32 %v1608_v44, %v2182_v0  ;;  %1609 = vrcp.f32 %v907_v50 }
 0xb87   :  { %v939_v48 = vpack.c.bf16 %v932_v46, %v931_v37  ;;  %v1445_v37 = vld [vmem:[#allocation8 + $0x18] sm:$0xff] }
 0xb88   :  { %1158 = vmatpush.bf16.msrb.mxu1 %v1445_v37 }
 0xb8b   :  { %v1610_v51 = vpop.eup %1609 }
 0xb8c   :  { %v948_v40 = vpop.permute.xlu1 %947  ;;  %v933_v45 = vmul.f32 %v1610_v51, %v1594_v11 }
 0xb8d   :  { %972 = vmatpush.bf16.msrb.mxu0 %v948_v40 }
 0xb8f   :  { %v946_v43 = vpop.permute.xlu0 %945 }
 0xb91   :  { %973 = vmatpush.bf16.msrb.mxu0 %v946_v43 }
 0xb95   :  { %974 = vmatpush.bf16.msrb.mxu0 %v944_v47 }
 0xb98   :  { %1378 = vmatmul.msk.bf16.vlgmr.msrb.gmra.mxu0 %vm289_vm2, %v939_v48 }
 0xb9c   :  { %v916_v56 = vpop.xlane.xlu2 %915 }
 0xbac   :  { %v922_v63 = vpop.xlane.xlu2 %921 }
 0xbb7   :  { %v913_v55 = vpop.xlane.xlu1 %912 }
 0xbba   :  { %v910_v41 = vpop.xlane.xlu0 %909 }
 0xbbb   :  { %1611 = vrcp.f32 %v910_v41 }
 0xbbc   :  { %1613 = vrcp.f32 %v913_v55 }
 0xbbd   :  { %1615 = vrcp.f32 %v916_v56 }
 0xbc1   :  { %v1612_v52 = vpop.eup %1611 }
 0xbc2   :  { %v934_v54 = vmul.f32 %v1612_v52, %v1602_v34  ;;  %v1614_v58 = vpop.eup %1613  ;;  %v919_v60 = vpop.xlane.xlu0 %918 }
 0xbc3   :  { %v1616_v53 = vpop.eup %1615  ;;  %v935_v59 = vmul.f32 %v1614_v58, %v1600_v32  ;;  %1617 = vrcp.f32 %v919_v60 }
 0xbc4   :  { %v940_v49 = vpack.c.bf16 %v934_v54, %v933_v45  ;;  %v936_v57 = vmul.f32 %v1616_v53, %v2192_v18  ;;  %1619 = vrcp.f32 %v922_v63 }
 0xbc6   :  { %1379 = vmatmul.msk.bf16.gmra.mxu0 %vm289_vm2, %v940_v49  ;;  %v941_v62 = vpack.c.bf16 %v936_v57, %v935_v59  ;;  %v1444_v49 = vld [vmem:[#allocation8 + $0x10] sm:$0xff]  ;;  %v1449_v59 = vld [vmem:[%s2280_s9 + $0x38] sm:$0xff] }
 0xbc7   :  { %1159 = vmatpush.bf16.msrb.mxu1 %v1444_v49  ;;  %1214 = vmatpush.bf16.msra.mxu2 %v1449_v59 }
 0xbc9   :  { %v1618_v0 = vpop.eup %1617 }
 0xbca   :  { %v1620_v61 = vpop.eup %1619  ;;  %v937_v4 = vmul.f32 %v1618_v0, %v1604_v29 }
 0xbcb   :  { %v938_v1 = vmul.f32 %v1620_v61, %v1598_v28 }
 0xbcd   :  { %v942_v5 = vpack.c.bf16 %v938_v1, %v937_v4 }
 0xbd6   :  { %1380 = vmatmul.msk.bf16.gmra.mxu0 %vm289_vm2, %v941_v62 }
 0xbe6   :  { %1381 = vmatmul.msk.bf16.gmra.mxu0 %vm289_vm2, %v942_v5 }
 0xc15   :  { %v976_v8 = vpop.f32.mrf.mxu0 }
 0xc1d   :  { %v978_v9 = vpop.f32.mrf.mxu0 }
 0xc43   :  { %v981_v10 = vpop.f32.mrf.mxu0 }
 0xc4b   :  { %v983_v11 = vpop.f32.mrf.mxu0 }
 0xc4c   :  { %v1514_v12 = vpack.i.bf16 %v983_v11, %v981_v10 }
 0xc4e   :  { %1515 = vrot.lane.b32.xlu1 %v1514_v12, %s1813_s22 }
 0xc53   :  { %v986_v16 = vpop.f32.mrf.mxu0 }
 0xc5b   :  { %v988_v17 = vpop.f32.mrf.mxu0 }
 0xc5c   :  { %v1519_v18 = vpack.i.bf16 %v988_v17, %v986_v16  ;;  %v1541_v16 = vld [vmem:[#allocation10 + $0x1] ss:$0 sm:$0xff] }
 0xc5e   :  { %1520 = vrot.lane.b32.xlu0 %v1519_v18, %s1816_s30 }
 0xc63   :  { %v991_v7 = vpop.f32.mrf.mxu0 }
 0xc6b   :  { %v993_v15 = vpop.f32.mrf.mxu0 }
 0xc6c   :  { %v1524_v20 = vpack.i.bf16 %v993_v15, %v991_v7 }
 0xc6e   :  { %1525 = vrot.lane.b32.xlu2 %v1524_v20, %s1823_s2  ;;  %v1542_v20 = vld [vmem:[%s2283_s12 + $0x1] ss:$0 sm:$0xff] }
 0xcc0   :  { %v1516_v21 = vpop.permute.xlu1 %1515 }
 0xcc1   :  { %v1518_v22 = vunpack.i.h.bf16 %v1516_v21  ;;  %v1517_v19 = vunpack.i.l.bf16 %v1516_v21 }
 0xcc3   :  { %v1021_v30 = vsel %vm235_vm1, %v978_v9, %v1518_v22  ;;  %v1020_v31 = vsel %vm235_vm1, %v976_v8, %v1517_v19 }
 0xcc8   :  { %v1526_v24 = vpop.permute.xlu2 %1525 }
 0xcc9   :  { %v1528_v23 = vunpack.i.h.bf16 %v1526_v24  ;;  %v1527_v32 = vunpack.i.l.bf16 %v1526_v24 }
 0xcd0   :  { %v1521_v26 = vpop.permute.xlu0 %1520 }
 0xcd1   :  { %v1523_v28 = vunpack.i.h.bf16 %v1521_v26  ;;  %v1522_v25 = vunpack.i.l.bf16 %v1521_v26  ;;  %v1448_v26 = vld [vmem:[%s2280_s9 + $0x30] sm:$0xff] }
 0xcd2   :  { %1215 = vmatpush.bf16.msra.mxu2 %v1448_v26 }
 0xcd3   :  { %v1023_v33 = vsel %vm461_vm3, %v1021_v30, %v1523_v28  ;;  %v1022_v34 = vsel %vm461_vm3, %v1020_v31, %v1522_v25  ;;  %v1447_v28 = vld [vmem:[%s2280_s9 + $0x28] sm:$0xff]  ;;  %v1446_v25 = vld [vmem:[%s2280_s9 + $0x20] sm:$0xff] }
 0xcd4   :  { %v1024_v35 = vsel %vm464_vm4, %v1022_v34, %v1527_v32  ;;  %v1025_v36 = vsel %vm464_vm4, %v1023_v33, %v1528_v23  ;;  %v1543_v31 = vld [vmem:[%s2279_s8 + $0x1] ss:$0 sm:$0xff] }
 0xcd5   :  { %v1026_v29 = vpack.c.bf16 %v1025_v36, %v1024_v35 }
 0xcd6   :  { %1216 = vmatpush.bf16.msra.mxu2 %v1447_v28 }
 0xcd7   :  { %1391 = vmatmul.msk.bf16.vlgmr.msrb.gmra.mxu2 %vm181_vm0, %v1026_v29  ;;  %v1544_v29 = vld [vmem:[%s2281_s10 + $0x1] ss:$0 sm:$0xff]  ;;  %s1825_s10 = smov [#allocation13]  }
 0xcd8   :  { %s1290_s11 = sshll.u32 %s1825_s10, 4  ;;  %s1291_s11 = int_to_ptr.vmem [resolvable:$true] %s1290_s11 }
 0xcda   :  { %1217 = vmatpush.bf16.msra.mxu2 %v1446_v25 }
 0xd5a   :  { %v1061_v38 = vpop.f32.mrf.mxu2 }
 0xd5b   :  { %v1062_v39 = vadd.f32 %v1540_v27, %v1061_v38 }
 0xd5d   :  { %v1066_v40 = vadd.f32 %v1062_v39, %v2126_v2 }
 0xd5f   :  { %v1068_v42 = vsel %vm181_vm0, %v1066_v40, 0.0 }
 0xd60   :  { %1069 = vadd.xlane.f32.xlu0 %v1068_v42 }
 0xd62   :  { %v1063_v43 = vpop.f32.mrf.mxu2 }
 0xd63   :  { %v1064_v44 = vadd.f32 %v1540_v27, %v1063_v43 }
 0xd65   :  { %v1067_v46 = vadd.f32 %v1064_v44, %v2128_v3 }
 0xd67   :  { %v1071_v47 = vsel %vm181_vm0, %v1067_v46, 0.0 }
 0xd68   :  { %1072 = vadd.xlane.f32.xlu1 %v1071_v47 }
 0xdd3   :  { %v1070_v48 = vpop.xlane.xlu0 %1069 }
 0xdd4   :  { %v1074_v50 = vmul.f32 %v1070_v48, %v2078_v14 }
 0xdd6   :  { %v1076_v41 = vsub.f32 %v1066_v40, %v1074_v50 }
 0xdd8   :  { %v1078_v51 = vmul.f32 %v1076_v41, %v1076_v41 }
 0xdda   :  { %v1080_v52 = vsel %vm181_vm0, %v1078_v51, 0.0 }
 0xddb   :  { %v1073_v2 = vpop.xlane.xlu1 %1072  ;;  %1081 = vadd.xlane.f32.xlu2 %v1080_v52 }
 0xddc   :  { %v1075_v45 = vmul.f32 %v1073_v2, %v2078_v14 }
 0xdde   :  { %v1077_v54 = vsub.f32 %v1067_v46, %v1075_v45 }
 0xde0   :  { %v1079_v55 = vmul.f32 %v1077_v54, %v1077_v54 }
 0xde2   :  { %v1083_v3 = vsel %vm181_vm0, %v1079_v55, 0.0 }
 0xde3   :  { %1084 = vadd.xlane.f32.xlu0 %v1083_v3 }
 0xe4e   :  { %v1082_v56 = vpop.xlane.xlu2 %1081 }
 0xe4f   :  { %v1086_v58 = vmul.f32 %v1082_v56, %v2078_v14 }
 0xe51   :  { %v1088_v53 = vadd.f32 1e-05, %v1086_v58 }
 0xe53   :  { %1621 = vrsqrt.f32 %v1088_v53  ;;  %vm1096_vm3 = vweird.f32 %v1088_v53 }
 0xe56   :  { %v1085_v57 = vpop.xlane.xlu0 %1084 }
 0xe57   :  { %v1087_v60 = vmul.f32 %v1085_v57, %v2078_v14 }
 0xe59   :  { %v1622_v62 = vpop.eup %1621  ;;  %v1089_v63 = vadd.f32 1e-05, %v1087_v60 }
 0xe5a   :  { %v1091_v0 = vmul.f32 %v1622_v62, %v1088_v53  ;;  %vm1097_vm1 = vweird.f32 %v1622_v62 }
 0xe5b   :  { %1623 = vrsqrt.f32 %v1089_v63  ;;  %vm1098_vm4 = vmor %vm1096_vm3, %vm1097_vm1  ;;  %vm1106_vm8 = vweird.f32 %v1089_v63 }
 0xe5c   :  { %v1092_v61 = vmul.f32 %v1622_v62, %v1091_v0 }
 0xe5e   :  { %v1093_v4 = vmul.f32 0.5, %v1092_v61 }
 0xe60   :  { %v1094_v1 = vsub.f32 1.5, %v1093_v4 }
 0xe61   :  { %v1624_v5 = vpop.eup %1623 }
 0xe62   :  { %v1095_v8 = vmul.f32 %v1622_v62, %v1094_v1  ;;  %v1101_v9 = vmul.f32 %v1624_v5, %v1089_v63  ;;  %vm1107_vm7 = vweird.f32 %v1624_v5  ;;  %v1545_v1 = vld [vmem:[#allocation11 + $0x1] ss:$0 sm:$0xff] }
 0xe63   :  { %vm1108_vm9 = vmor %vm1106_vm8, %vm1107_vm7 }
 0xe64   :  { %v1102_v10 = vmul.f32 %v1624_v5, %v1101_v9  ;;  %v1099_v11 = vsel %vm1098_vm4, %v1622_v62, %v1095_v8 }
 0xe65   :  { %v1110_v6 = vmul.f32 %v1099_v11, %v1076_v41 }
 0xe66   :  { %v1103_v12 = vmul.f32 0.5, %v1102_v10 }
 0xe67   :  { %v1117_v15 = vmul.f32 %v1541_v16, %v1110_v6 }
 0xe68   :  { %v1104_v13 = vsub.f32 1.5, %v1103_v12 }
 0xe69   :  { %v1124_v22 = vadd.f32 %v1542_v20, %v1117_v15 }
 0xe6a   :  { %v1105_v17 = vmul.f32 %v1624_v5, %v1104_v13 }
 0xe6c   :  { %v1109_v18 = vsel %vm1108_vm9, %v1624_v5, %v1105_v17 }
 0xe6d   :  { %v1111_v7 = vmul.f32 %v1109_v18, %v1077_v54 }
 0xe6f   :  { %v1118_v21 = vmul.f32 %v1541_v16, %v1111_v7 }
 0xe71   :  { %v1125_v19 = vadd.f32 %v1542_v20, %v1118_v21 }
 0xe73   :  { %v1126_v24 = vpack.c.bf16 %v1125_v19, %v1124_v22 }
 0xe75   :  { %1402 = vmatmul.msk.bf16.vlgmr.msrb.gmra.mxu1 %vm181_vm0, %v1126_v24 }
 0xef2   :  { %v1161_v30 = vpop.f32.mrf.mxu1 }
 0xef3   :  { %v1162_v23 = vadd.f32 %v1543_v31, %v1161_v30 }
 0xef5   :  { %v1166_v34 = vmax.f32 %v1162_v23, 0.0 }
 0xefa   :  { %v1163_v32 = vpop.f32.mrf.mxu1 }
 0xefb   :  { %v1164_v33 = vadd.f32 %v1543_v31, %v1163_v32 }
 0xefd   :  { %v1167_v35 = vmax.f32 %v1164_v33, 0.0 }
 0xeff   :  { %v1168_v36 = vpack.c.bf16 %v1167_v35, %v1166_v34 }
 0xf01   :  { %1428 = vmatmul.msk.bf16.vlgmr.msra.gmra.mxu2 %vm289_vm2, %v1168_v36 }
 0xf84   :  { %v1219_v27 = vpop.f32.mrf.mxu2 }
 0xf85   :  { %v1220_v38 = vadd.f32 %v1544_v29, %v1219_v27 }
 0xf87   :  { %v1224_v39 = vadd.f32 %v1220_v38, %v1124_v22 }
 0xf89   :  { %v1226_v40 = vsel %vm181_vm0, %v1224_v39, 0.0 }
 0xf8a   :  { %1227 = vadd.xlane.f32.xlu1 %v1226_v40 }
 0xf8c   :  { %v1221_v42 = vpop.f32.mrf.mxu2 }
 0xf8d   :  { %v1222_v43 = vadd.f32 %v1544_v29, %v1221_v42 }
 0xf8f   :  { %v1225_v44 = vadd.f32 %v1222_v43, %v1125_v19 }
 0xf91   :  { %v1229_v46 = vsel %vm181_vm0, %v1225_v44, 0.0 }
 0xf92   :  { %1230 = vadd.xlane.f32.xlu2 %v1229_v46 }
 0xffd   :  { %v1228_v47 = vpop.xlane.xlu1 %1227 }
 0xffe   :  { %v1232_v37 = vmul.f32 %v1228_v47, %v2078_v14 }
0x1000   :  { %v1234_v48 = vsub.f32 %v1224_v39, %v1232_v37 }
0x1002   :  { %v1236_v50 = vmul.f32 %v1234_v48, %v1234_v48 }
0x1004   :  { %v1238_v41 = vsel %vm181_vm0, %v1236_v50, 0.0 }
0x1005   :  { %v1231_v51 = vpop.xlane.xlu2 %1230  ;;  %1239 = vadd.xlane.f32.xlu0 %v1238_v41 }
0x1006   :  { %v1233_v52 = vmul.f32 %v1231_v51, %v2078_v14 }
0x1008   :  { %v1235_v2 = vsub.f32 %v1225_v44, %v1233_v52 }
0x100a   :  { %v1237_v45 = vmul.f32 %v1235_v2, %v1235_v2 }
0x100c   :  { %v1241_v54 = vsel %vm181_vm0, %v1237_v45, 0.0 }
0x100d   :  { %1242 = vadd.xlane.f32.xlu1 %v1241_v54 }
0x1078   :  { %v1240_v55 = vpop.xlane.xlu0 %1239 }
0x1079   :  { %v1244_v3 = vmul.f32 %v1240_v55, %v2078_v14 }
0x107b   :  { %v1246_v49 = vadd.f32 1e-05, %v1244_v3 }
0x107d   :  { %1625 = vrsqrt.f32 %v1246_v49  ;;  %vm1254_vm10 = vweird.f32 %v1246_v49 }
0x1080   :  { %v1243_v56 = vpop.xlane.xlu1 %1242 }
0x1081   :  { %v1245_v58 = vmul.f32 %v1243_v56, %v2078_v14  ;;  %v1546_v14 = vld [vmem:[%s2285_s14 + $0x1] ss:$0 sm:$0xff] }
0x1083   :  { %v1626_v53 = vpop.eup %1625  ;;  %v1247_v59 = vadd.f32 1e-05, %v1245_v58 }
0x1084   :  { %v1249_v57 = vmul.f32 %v1626_v53, %v1246_v49  ;;  %vm1255_vm2 = vweird.f32 %v1626_v53 }
0x1085   :  { %1627 = vrsqrt.f32 %v1247_v59  ;;  %vm1256_vm11 = vmor %vm1254_vm10, %vm1255_vm2  ;;  %vm1264_vm13 = vweird.f32 %v1247_v59 }
0x1086   :  { %v1250_v60 = vmul.f32 %v1626_v53, %v1249_v57 }
0x1088   :  { %v1251_v62 = vmul.f32 0.5, %v1250_v60 }
0x108a   :  { %v1252_v63 = vsub.f32 1.5, %v1251_v62 }
0x108b   :  { %v1628_v0 = vpop.eup %1627 }
0x108c   :  { %v1253_v61 = vmul.f32 %v1626_v53, %v1252_v63  ;;  %v1259_v4 = vmul.f32 %v1628_v0, %v1247_v59  ;;  %vm1265_vm12 = vweird.f32 %v1628_v0 }
0x108d   :  { %vm1266_vm14 = vmor %vm1264_vm13, %vm1265_vm12 }
0x108e   :  { %v1257_v5 = vsel %vm1256_vm11, %v1626_v53, %v1253_v61  ;;  %v1260_v8 = vmul.f32 %v1628_v0, %v1259_v4 }
0x108f   :  { %v1268_v9 = vmul.f32 %v1257_v5, %v1234_v48 }
0x1090   :  { %v1261_v10 = vmul.f32 0.5, %v1260_v8 }
0x1091   :  { %v1275_v11 = vmul.f32 %v1545_v1, %v1268_v9 }
0x1092   :  { %v1262_v12 = vsub.f32 1.5, %v1261_v10 }
0x1093   :  { %v1282_v13 = vadd.f32 %v1546_v14, %v1275_v11 }
0x1094   :  { %v1263_v6 = vmul.f32 %v1628_v0, %v1262_v12 }
0x1095   :  { %1284 = vst.msk [vmem:[#allocation13] sm:$0xff] %vm181_vm0, %v1282_v13 }
0x1096   :  { %v1267_v16 = vsel %vm1266_vm14, %v1628_v0, %v1263_v6 }
0x1097   :  { %v1269_v17 = vmul.f32 %v1267_v16, %v1235_v2 }
0x1099   :  { %v1276_v18 = vmul.f32 %v1545_v1, %v1269_v17 }
0x109b   :  { %v1283_v7 = vadd.f32 %v1546_v14, %v1276_v18 }
0x109d   :  { %1285 = vst.msk [vmem:[#allocation13 + $0x8] sm:$0xff] %vm181_vm0, %v1283_v7 }
0x109e   :  { %1298 = dma.vmem_to_hbm [thread:$0]  %s1291_s11, 256, %s1293_s20, [#allocation4], %s1812_s21, %s1812_s21, %s1813_s22  }
0x109f   :  { %1805 = dma.done.wait [#allocation4], 256  }
0x10a0   :  { %1806 = vsyncadd [#allocation4], 4294967040 }
0x10a1   :  { %1303 = vsyncpa [#allocation3], 1 }
0x10a2   :  { %1304 = vsyncpa [#allocation6], 1 }
0x10a3   :  { %1305 = vsyncpa [#allocation9], 1 }
0x10a4   :  { %1306 = vsyncpa [#allocation12], 1 }
0x10a5   :  { %1307 = vsyncpa [#allocation4], 1 }

</bundles_post_ra>
